<compile_context>
chip_gen: v5e
topology: v5e:2x2
jax: 0.10.0
libtpu: 0.0.40
codegen_flags: <defaults>
</compile_context>

<pallas_src>
import functools
import math

import jax
import jax.numpy as jnp
from jax.experimental import pallas as pl
from jax.experimental.pallas import tpu as pltpu


_MXU_DTYPE = jnp.bfloat16  # MXU operand dtype; accumulation stays f32.


def _fast_recip(x):
    """EUP approximate reciprocal + one Newton-Raphson step (~f32 accurate, VPU-divide free)."""
    r = pl.reciprocal(x, approx=True)
    return r * (2.0 - x * r)


def encoder_layer_kernel(q_ref, k_ref, wq_ref, bq_ref, wkv_ref, bkv_ref,
                         wo_ref, bo_ref, g1_ref, be1_ref,
                         w1_ref, b1_ref, w2_ref, b2_ref, g2_ref, be2_ref,
                         o_ref, *, nhead, eps):
    B, L, E = q_ref.shape
    S = k_ref.shape[1]
    Dh = E // nhead
    inv_e = 1.0 / E

    # Flatten the batch tile into the matmul M dimension (bigger MXU calls, fewer drains).
    # Residual path stays f32; only MXU operands are cast to bf16.
    q2d = q_ref[...].reshape(B * L, E)                       # f32, kept for residual
    q_mxu = q2d.astype(_MXU_DTYPE)
    k_mxu = k_ref[...].reshape(B * S, E).astype(_MXU_DTYPE)

    # --- projections (weights pre-transposed + bf16; 1/sqrt(Dh) folded into wq/bq) ---
    Q = jnp.dot(q_mxu, wq_ref[...], preferred_element_type=jnp.float32) + bq_ref[...]
    # Fused K/V projection: one (B*S, E) x (E, 2E) matmul, then slice.
    KV = jnp.dot(k_mxu, wkv_ref[...], preferred_element_type=jnp.float32) + bkv_ref[...]

    Q3 = Q.reshape(B, L, E)
    K3 = KV[:, :E].reshape(B, S, E)
    V3 = KV[:, E:].reshape(B, S, E)

    # --- scaled dot-product attention, batched over the batch tile ---
    # Heads statically unrolled (nhead is small); scores/softmax in f32 on VPU/EUP,
    # probabilities cast to bf16 for the PV matmul.
    # TODO(synk): for large nhead / long S, replace with a head-major batched contraction
    # (pltpu.einshape to (H*B, L, Dh)) plus an online-softmax over S tiles.
    heads = []
    for h in range(nhead):
        sl = slice(h * Dh, (h + 1) * Dh)
        qh = Q3[:, :, sl].astype(_MXU_DTYPE)
        kh = K3[:, :, sl].astype(_MXU_DTYPE)
        vh = V3[:, :, sl].astype(_MXU_DTYPE)
        s = jnp.einsum('bld,bsd->bls', qh, kh,
                       preferred_element_type=jnp.float32)            # (B, L, S)
        s = s - jnp.max(s, axis=-1, keepdims=True)
        p = jnp.exp(s)
        p = p * _fast_recip(jnp.sum(p, axis=-1, keepdims=True))        # EUP reciprocal
        heads.append(jnp.einsum('bls,bsd->bld', p.astype(_MXU_DTYPE), vh,
                                preferred_element_type=jnp.float32))   # (B, L, Dh)
    attn = jnp.concatenate(heads, axis=-1).reshape(B * L, E)

    # --- output projection ---
    attn_out = jnp.dot(attn.astype(_MXU_DTYPE), wo_ref[...],
                       preferred_element_type=jnp.float32) + bo_ref[...]

    # --- residual + LayerNorm 1 (dropout1 = identity); f32 VPU math ---
    x = q2d + attn_out
    mu = jnp.sum(x, axis=-1, keepdims=True) * inv_e
    xc = x - mu
    var = jnp.sum(xc * xc, axis=-1, keepdims=True) * inv_e
    x = xc * jax.lax.rsqrt(var + eps) * g1_ref[...] + be1_ref[...]

    # --- feed-forward: linear2(relu(linear1(x))) (dropout = identity) ---
    # TODO(synk): at production dim_feedforward, chunk the F dimension (second 'arbitrary'
    # grid axis or pltpu.emit_pipeline) so w1/w2 need not be fully VMEM-resident on v7x.
    h1 = jnp.dot(x.astype(_MXU_DTYPE), w1_ref[...],
                 preferred_element_type=jnp.float32) + b1_ref[...]
    h1 = jnp.maximum(h1, 0.0)
    ff = jnp.dot(h1.astype(_MXU_DTYPE), w2_ref[...],
                 preferred_element_type=jnp.float32) + b2_ref[...]

    # --- residual + LayerNorm 2 (dropout2 = identity) ---
    y = x + ff
    mu2 = jnp.sum(y, axis=-1, keepdims=True) * inv_e
    yc = y - mu2
    var2 = jnp.sum(yc * yc, axis=-1, keepdims=True) * inv_e
    y = yc * jax.lax.rsqrt(var2 + eps) * g2_ref[...] + be2_ref[...]

    o_ref[...] = y.reshape(B, L, E).astype(o_ref.dtype)


def _vmem_capacity_bytes():
    """Physical VMEM per core (generation-aware); conservative default if query fails."""
    try:
        return int(pltpu.get_tpu_info().vmem_capacity_bytes)
    except Exception:
        return 128 << 20          # v5e/v6e; v7x (64 MiB) is handled when the query succeeds


def _pick_batch_tile(n, l, s, e, f, nhead, act_budget_bytes, min_grid=2):
    """Largest divisor of n whose per-step activations fit the VMEM budget.  Keeps at least
    `min_grid` grid steps (so v7x megacore can split the parallel axis) and stops once the
    flattened matmul M dim (B_TILE*L) reaches ~512 rows."""
    best = 1
    for cand in range(1, n + 1):
        if n % cand:
            continue
        if n >= min_grid and n // cand < min_grid:
            break
        # conservative f32 estimate of live per-step activations
        act_bytes = 4 * cand * (l * (4 * e + f) + 3 * s * e + nhead * l * s)
        if cand > 1 and act_bytes > act_budget_bytes:
            break
        best = cand
        if cand * l >= 512:
            break
    return best


def transformer_encoder_layer(query, key, params, nhead, b_tile=None, eps=1e-5):
    """query: (L, N, E), key: (S, N, E) -> (L, N, E). Eval-mode forward (dropout = identity)."""
    L, N, E = query.shape
    S = key.shape[0]
    F = params["w1"].shape[0]
    Dh = E // nhead
    scale = 1.0 / math.sqrt(Dh)

    # TODO(synk): the (L,N,E)<->(N,L,E) transposes are pure layout plumbing; absorbing them
    # into the BlockSpec needs batch-nonleading contractions in-kernel, so they stay for now.
    qb = jnp.transpose(query, (1, 0, 2))   # (N, L, E)
    kb = jnp.transpose(key, (1, 0, 2))     # (N, S, E)

    # Pre-transpose all weights once in the wrapper (no in-kernel .T / XLU relayout), fold the
    # attention scale into the Q projection, and cast MXU operands to bf16 (biases / LN params
    # stay f32 for f32 accumulation and f32 VPU math).
    wqkv, bqkv = params["wqkv"], params["bqkv"]
    wq_t = (jnp.transpose(wqkv[:E, :]) * scale).astype(_MXU_DTYPE)    # (E, E)
    bq = (bqkv[:E] * scale).reshape(1, E).astype(jnp.float32)
    wkv_t = jnp.transpose(wqkv[E:, :]).astype(_MXU_DTYPE)             # (E, 2E): [0:E]=K, [E:]=V
    bkv = bqkv[E:].reshape(1, 2 * E).astype(jnp.float32)
    wo_t = jnp.transpose(params["wo"]).astype(_MXU_DTYPE)             # (E, E)
    bo = params["bo"].reshape(1, E).astype(jnp.float32)
    w1_t = jnp.transpose(params["w1"]).astype(_MXU_DTYPE)             # (E, F)
    w2_t = jnp.transpose(params["w2"]).astype(_MXU_DTYPE)             # (F, E)

    # Generation-aware budgets: ~48 MiB activation budget on 128 MiB chips (v5e/v6e),
    # ~24 MiB on v7x (64 MiB VMEM); never request more than ~3/4 of physical VMEM.
    vmem_phys = _vmem_capacity_bytes()
    act_budget = max(8 << 20, min((vmem_phys * 3) // 8, 48 << 20))
    vmem_cap = max(32 << 20, (vmem_phys * 3) // 4)

    if b_tile is None:
        b_tile = _pick_batch_tile(N, L, S, E, F, nhead, act_budget)
    assert N % b_tile == 0
    grid = (N // b_tile,)

    # Advisory cost estimate (lets XLA schedule the surrounding transposes sensibly).
    flops = 2 * N * (L * E * E + S * E * 2 * E + 2 * L * S * E + L * E * E + 2 * L * E * F)
    transcendentals = N * (nhead * L * S + 4 * L)
    weight_bytes = 2 * (4 * E * E + 2 * E * F) + 4 * (9 * E + F)
    bytes_accessed = 4 * N * (2 * L * E + S * E) + weight_bytes
    cost = pl.CostEstimate(flops=int(flops), transcendentals=int(transcendentals),
                           bytes_accessed=int(bytes_accessed))

    # Size the VMEM limit from what the kernel actually holds: single-buffered bf16 weights,
    # double-buffered I/O tiles, plus activation scratch and headroom; clamp to the
    # generation-aware cap so v7x (64 MiB physical) is never over-promised.
    tile_io_bytes = 4 * b_tile * (2 * L * E + S * E)
    scratch_bytes = 4 * b_tile * (L * (4 * E + F) + 2 * S * E + nhead * L * S)
    vmem_limit = weight_bytes + 2 * tile_io_bytes + scratch_bytes + (8 << 20)
    vmem_limit = int(min(max(vmem_limit, 32 << 20), vmem_cap))

    def build(weight_pipeline_mode):
        def wspec(shape):
            # Constant-index weights/biases: their block never changes across the grid, so a
            # single VMEM buffer is enough (no double-buffering).
            return pl.BlockSpec(shape, lambda b: (0,) * len(shape),
                                pipeline_mode=weight_pipeline_mode)

        return pl.pallas_call(
            functools.partial(encoder_layer_kernel, nhead=nhead, eps=eps),
            out_shape=jax.ShapeDtypeStruct((N, L, E), query.dtype),
            grid_spec=pltpu.PrefetchScalarGridSpec(
                num_scalar_prefetch=0,
                grid=grid,
                in_specs=[
                    pl.BlockSpec((b_tile, L, E), lambda b: (b, 0, 0)),   # query tile
                    pl.BlockSpec((b_tile, S, E), lambda b: (b, 0, 0)),   # key tile
                    wspec((E, E)),        # wq^T (scale folded, bf16)
                    wspec((1, E)),        # bq (scale folded)
                    wspec((E, 2 * E)),    # wkv^T (fused K/V, bf16)
                    wspec((1, 2 * E)),    # bkv
                    wspec((E, E)),        # wo^T (bf16)
                    wspec((1, E)),        # bo
                    wspec((1, E)),        # norm1 gamma
                    wspec((1, E)),        # norm1 beta
                    wspec((E, F)),        # w1^T (bf16)
                    wspec((1, F)),        # b1
                    wspec((F, E)),        # w2^T (bf16)
                    wspec((1, E)),        # b2
                    wspec((1, E)),        # norm2 gamma
                    wspec((1, E)),        # norm2 beta
                ],
                out_specs=pl.BlockSpec((b_tile, L, E), lambda b: (b, 0, 0)),
            ),
            compiler_params=pltpu.CompilerParams(
                dimension_semantics=("parallel",),
                vmem_limit_bytes=vmem_limit),
            cost_estimate=cost,
        )

    args = (qb, kb, wq_t, bq, wkv_t, bkv, wo_t, bo,
            params["g1"].reshape(1, -1).astype(jnp.float32),
            params["be1"].reshape(1, -1).astype(jnp.float32),
            w1_t, params["b1"].reshape(1, -1).astype(jnp.float32),
            w2_t, params["b2"].reshape(1, -1).astype(jnp.float32),
            params["g2"].reshape(1, -1).astype(jnp.float32),
            params["be2"].reshape(1, -1).astype(jnp.float32))

    try:
        out = build(pl.Buffered(1))(*args)          # single-buffer the constant weights
    except Exception:                               # fallback: default (double) buffering
        out = build(None)(*args)

    return jnp.transpose(out, (1, 0, 2))


# ------------------------- pure-JAX reference -------------------------
def _layernorm(x, g, b, eps=1e-5):
    mu = jnp.mean(x, axis=-1, keepdims=True)
    var = jnp.mean((x - mu) ** 2, axis=-1, keepdims=True)
    return (x - mu) * jax.lax.rsqrt(var + eps) * g + b


def reference(query, key, params, nhead):
    L, N, E = query.shape
    S = key.shape[0]
    Dh = E // nhead
    wqkv, bqkv = params["wqkv"], params["bqkv"]
    Q = query @ wqkv[:E].T + bqkv[:E]
    K = key @ wqkv[E:2 * E].T + bqkv[E:2 * E]
    V = key @ wqkv[2 * E:].T + bqkv[2 * E:]

    def split(x, T):
        return x.reshape(T, N, nhead, Dh).transpose(1, 2, 0, 3)   # (N,H,T,Dh)

    Qh, Kh, Vh = split(Q, L), split(K, S), split(V, S)
    s = jnp.einsum('nhld,nhsd->nhls', Qh, Kh) / (Dh ** 0.5)
    p = jax.nn.softmax(s, axis=-1)
    a = jnp.einsum('nhls,nhsd->nhld', p, Vh)
    a = a.transpose(2, 0, 1, 3).reshape(L, N, E)
    attn_out = a @ params["wo"].T + params["bo"]

    x = _layernorm(query + attn_out, params["g1"], params["be1"])
    ff = jax.nn.relu(x @ params["w1"].T + params["b1"]) @ params["w2"].T + params["b2"]
    return _layernorm(x + ff, params["g2"], params["be2"])


if __name__ == "__main__":
    d_model, nhead, dim_ff = 32, 4, 64
    L, S, N = 8, 8, 2

    root = jax.random.PRNGKey(0)
    keys = jax.random.split(root, 8)

    params = {
        "wqkv": 0.05 * jax.random.normal(keys[0], (3 * d_model, d_model), jnp.float32),
        "bqkv": 0.05 * jax.random.normal(keys[1], (3 * d_model,), jnp.float32),
        "wo":   0.05 * jax.random.normal(keys[2], (d_model, d_model), jnp.float32),
        "bo":   0.05 * jax.random.normal(keys[3], (d_model,), jnp.float32),
        "w1":   0.05 * jax.random.normal(keys[4], (dim_ff, d_model), jnp.float32),
        "b1":   0.05 * jax.random.normal(keys[5], (dim_ff,), jnp.float32),
        "w2":   0.05 * jax.random.normal(keys[6], (d_model, dim_ff), jnp.float32),
        "b2":   jnp.zeros((d_model,), jnp.float32),
        "g1":   jnp.ones((d_model,), jnp.float32),
        "be1":  jnp.zeros((d_model,), jnp.float32),
        "g2":   jnp.ones((d_model,), jnp.float32),
        "be2":  jnp.zeros((d_model,), jnp.float32),
    }

    qkeys = jax.random.split(jax.random.PRNGKey(0), 2)
    query = jax.random.normal(qkeys[0], (L, N, d_model), jnp.float32)
    key_in = jax.random.normal(qkeys[1], (S, N, d_model), jnp.float32)

    out = transformer_encoder_layer(query, key_in, params, nhead)
    out = jax.block_until_ready(out)

    ref = reference(query, key_in, params, nhead)
    assert out.shape == (L, N, d_model)
    # bf16 MXU operands (f32 accumulation) -> tolerance looser than the pure-f32 variant.
    max_err = jnp.max(jnp.abs(out - ref))
    assert max_err < 3e-2, f"max abs err {max_err}"

    print("KERNEL_OK")
</pallas_src>

<mosaic_0001>
module attributes {stable_mosaic.version = 11 : i64} {
  func.func @encoder_layer_kernel(%arg0: i32, %arg1: memref<1x8x32xf32, #tpu.memory_space<vmem>>, %arg2: memref<1x8x32xf32, #tpu.memory_space<vmem>>, %arg3: memref<32x32xbf16, #tpu.memory_space<vmem>>, %arg4: memref<1x32xf32, #tpu.memory_space<vmem>>, %arg5: memref<32x64xbf16, #tpu.memory_space<vmem>>, %arg6: memref<1x64xf32, #tpu.memory_space<vmem>>, %arg7: memref<32x32xbf16, #tpu.memory_space<vmem>>, %arg8: memref<1x32xf32, #tpu.memory_space<vmem>>, %arg9: memref<1x32xf32, #tpu.memory_space<vmem>>, %arg10: memref<1x32xf32, #tpu.memory_space<vmem>>, %arg11: memref<32x64xbf16, #tpu.memory_space<vmem>>, %arg12: memref<1x64xf32, #tpu.memory_space<vmem>>, %arg13: memref<64x32xbf16, #tpu.memory_space<vmem>>, %arg14: memref<1x32xf32, #tpu.memory_space<vmem>>, %arg15: memref<1x32xf32, #tpu.memory_space<vmem>>, %arg16: memref<1x32xf32, #tpu.memory_space<vmem>>, %arg17: memref<1x8x32xf32, #tpu.memory_space<vmem>>) attributes {dimension_semantics = [#tpu.dimension_semantics<parallel>], iteration_bounds = array<i64: 2>, scalar_prefetch = 0 : i64, scratch_operands = 0 : i64, tpu.core_type = #tpu.core_type<tc>, window_params = [{transform_indices = @transform_0, window_bounds = array<i64: 1, 8, 32>}, {transform_indices = @transform_1, window_bounds = array<i64: 1, 8, 32>}, {pipeline_mode = #tpu.pipeline_mode<synchronous>, transform_indices = @transform_2, window_bounds = array<i64: 32, 32>}, {pipeline_mode = #tpu.pipeline_mode<synchronous>, transform_indices = @transform_3, window_bounds = array<i64: 1, 32>}, {pipeline_mode = #tpu.pipeline_mode<synchronous>, transform_indices = @transform_4, window_bounds = array<i64: 32, 64>}, {pipeline_mode = #tpu.pipeline_mode<synchronous>, transform_indices = @transform_5, window_bounds = array<i64: 1, 64>}, {pipeline_mode = #tpu.pipeline_mode<synchronous>, transform_indices = @transform_6, window_bounds = array<i64: 32, 32>}, {pipeline_mode = #tpu.pipeline_mode<synchronous>, transform_indices = @transform_7, window_bounds = array<i64: 1, 32>}, {pipeline_mode = #tpu.pipeline_mode<synchronous>, transform_indices = @transform_8, window_bounds = array<i64: 1, 32>}, {pipeline_mode = #tpu.pipeline_mode<synchronous>, transform_indices = @transform_9, window_bounds = array<i64: 1, 32>}, {pipeline_mode = #tpu.pipeline_mode<synchronous>, transform_indices = @transform_10, window_bounds = array<i64: 32, 64>}, {pipeline_mode = #tpu.pipeline_mode<synchronous>, transform_indices = @transform_11, window_bounds = array<i64: 1, 64>}, {pipeline_mode = #tpu.pipeline_mode<synchronous>, transform_indices = @transform_12, window_bounds = array<i64: 64, 32>}, {pipeline_mode = #tpu.pipeline_mode<synchronous>, transform_indices = @transform_13, window_bounds = array<i64: 1, 32>}, {pipeline_mode = #tpu.pipeline_mode<synchronous>, transform_indices = @transform_14, window_bounds = array<i64: 1, 32>}, {pipeline_mode = #tpu.pipeline_mode<synchronous>, transform_indices = @transform_15, window_bounds = array<i64: 1, 32>}, {transform_indices = @transform_16, window_bounds = array<i64: 1, 8, 32>}]} {
    %c0 = arith.constant 0 : index
    %c0_0 = arith.constant 0 : index
    %c0_1 = arith.constant 0 : index
    %0 = vector.load %arg1[%c0, %c0_0, %c0_1] : memref<1x8x32xf32, #tpu.memory_space<vmem>>, vector<1x8x32xf32>
    %1 = vector.shape_cast %0 : vector<1x8x32xf32> to vector<8x32xf32>
    %2 = arith.truncf %1 : vector<8x32xf32> to vector<8x32xbf16>
    %c0_2 = arith.constant 0 : index
    %c0_3 = arith.constant 0 : index
    %c0_4 = arith.constant 0 : index
    %3 = vector.load %arg2[%c0_2, %c0_3, %c0_4] : memref<1x8x32xf32, #tpu.memory_space<vmem>>, vector<1x8x32xf32>
    %4 = vector.shape_cast %3 : vector<1x8x32xf32> to vector<8x32xf32>
    %5 = arith.truncf %4 : vector<8x32xf32> to vector<8x32xbf16>
    %c0_5 = arith.constant 0 : index
    %c0_6 = arith.constant 0 : index
    %6 = vector.load %arg3[%c0_5, %c0_6] : memref<32x32xbf16, #tpu.memory_space<vmem>>, vector<32x32xbf16>
    %cst = arith.constant dense<0.000000e+00> : vector<8x32xf32>
    %7 = tpu.matmul %2, %6, %cst {dimension_numbers = #tpu.dot_dimension_numbers<[1], [0], [0], [1], [0, 0, 1, 1], [], []>} : vector<8x32xbf16>, vector<32x32xbf16>, vector<8x32xf32> -> vector<8x32xf32>
    %c0_7 = arith.constant 0 : index
    %c0_8 = arith.constant 0 : index
    %8 = vector.load %arg4[%c0_7, %c0_8] : memref<1x32xf32, #tpu.memory_space<vmem>>, vector<1x32xf32>
    %9 = vector.broadcast %8 : vector<1x32xf32> to vector<8x32xf32>
    %10 = arith.addf %7, %9 : vector<8x32xf32>
    %c0_9 = arith.constant 0 : index
    %c0_10 = arith.constant 0 : index
    %11 = vector.load %arg5[%c0_9, %c0_10] : memref<32x64xbf16, #tpu.memory_space<vmem>>, vector<32x64xbf16>
    %cst_11 = arith.constant dense<0.000000e+00> : vector<8x64xf32>
    %12 = tpu.matmul %5, %11, %cst_11 {dimension_numbers = #tpu.dot_dimension_numbers<[1], [0], [0], [1], [0, 0, 1, 1], [], []>} : vector<8x32xbf16>, vector<32x64xbf16>, vector<8x64xf32> -> vector<8x64xf32>
    %c0_12 = arith.constant 0 : index
    %c0_13 = arith.constant 0 : index
    %13 = vector.load %arg6[%c0_12, %c0_13] : memref<1x64xf32, #tpu.memory_space<vmem>>, vector<1x64xf32>
    %14 = vector.broadcast %13 : vector<1x64xf32> to vector<8x64xf32>
    %15 = arith.addf %12, %14 : vector<8x64xf32>
    %16 = vector.shape_cast %10 : vector<8x32xf32> to vector<1x8x32xf32>
    %17 = vector.extract_strided_slice %15 {offsets = [0, 0], sizes = [8, 32], strides = [1, 1]} : vector<8x64xf32> to vector<8x32xf32>
    %18 = vector.shape_cast %17 : vector<8x32xf32> to vector<1x8x32xf32>
    %19 = vector.extract_strided_slice %15 {offsets = [0, 32], sizes = [8, 32], strides = [1, 1]} : vector<8x64xf32> to vector<8x32xf32>
    %20 = vector.shape_cast %19 : vector<8x32xf32> to vector<1x8x32xf32>
    %21 = vector.extract_strided_slice %16 {offsets = [0, 0, 0], sizes = [1, 8, 8], strides = [1, 1, 1]} : vector<1x8x32xf32> to vector<1x8x8xf32>
    %22 = arith.truncf %21 : vector<1x8x8xf32> to vector<1x8x8xbf16>
    %23 = vector.extract_strided_slice %18 {offsets = [0, 0, 0], sizes = [1, 8, 8], strides = [1, 1, 1]} : vector<1x8x32xf32> to vector<1x8x8xf32>
    %24 = arith.truncf %23 : vector<1x8x8xf32> to vector<1x8x8xbf16>
    %25 = vector.extract_strided_slice %20 {offsets = [0, 0, 0], sizes = [1, 8, 8], strides = [1, 1, 1]} : vector<1x8x32xf32> to vector<1x8x8xf32>
    %26 = arith.truncf %25 : vector<1x8x8xf32> to vector<1x8x8xbf16>
    "tpu.trace_start"() <{level = 10 : i32, message = "bld,bsd->bls"}> : () -> ()
    %cst_14 = arith.constant dense<0.000000e+00> : vector<1x8x8xf32>
    %27 = tpu.matmul %22, %24, %cst_14 {dimension_numbers = #tpu.dot_dimension_numbers<[2], [2], [1], [1], [0, 0, 0, 1, 1, 1], [0], [0]>} : vector<1x8x8xbf16>, vector<1x8x8xbf16>, vector<1x8x8xf32> -> vector<1x8x8xf32>
    "tpu.trace_stop"() : () -> ()
    %cst_15 = arith.constant dense<0xFF800000> : vector<1x8xf32>
    %28 = vector.multi_reduction <maximumf>, %27, %cst_15 [2] : vector<1x8x8xf32> to vector<1x8xf32>
    %29 = vector.shape_cast %28 : vector<1x8xf32> to vector<1x8x1xf32>
    %30 = vector.broadcast %29 : vector<1x8x1xf32> to vector<1x8x8xf32>
    %31 = arith.subf %27, %30 : vector<1x8x8xf32>
    %32 = math.exp %31 : vector<1x8x8xf32>
    %cst_16 = arith.constant dense<0.000000e+00> : vector<1x8xf32>
    %33 = vector.multi_reduction <add>, %32, %cst_16 [2] : vector<1x8x8xf32> to vector<1x8xf32>
    %34 = vector.shape_cast %33 : vector<1x8xf32> to vector<1x8x1xf32>
    %35 = tpu.reciprocal %34 {approx = true} : vector<1x8x1xf32> -> vector<1x8x1xf32>
    %36 = arith.mulf %34, %35 : vector<1x8x1xf32>
    %cst_17 = arith.constant 2.000000e+00 : f32
    %37 = vector.broadcast %cst_17 : f32 to vector<1x8x1xf32>
    %38 = arith.subf %37, %36 : vector<1x8x1xf32>
    %39 = arith.mulf %35, %38 : vector<1x8x1xf32>
    %40 = vector.broadcast %39 : vector<1x8x1xf32> to vector<1x8x8xf32>
    %41 = arith.mulf %32, %40 : vector<1x8x8xf32>
    %42 = arith.truncf %41 : vector<1x8x8xf32> to vector<1x8x8xbf16>
    "tpu.trace_start"() <{level = 10 : i32, message = "bls,bsd->bld"}> : () -> ()
    %cst_18 = arith.constant dense<0.000000e+00> : vector<1x8x8xf32>
    %43 = tpu.matmul %42, %26, %cst_18 {dimension_numbers = #tpu.dot_dimension_numbers<[2], [1], [1], [2], [0, 0, 0, 1, 1, 2], [0], [0]>} : vector<1x8x8xbf16>, vector<1x8x8xbf16>, vector<1x8x8xf32> -> vector<1x8x8xf32>
    "tpu.trace_stop"() : () -> ()
    %44 = vector.extract_strided_slice %16 {offsets = [0, 0, 8], sizes = [1, 8, 8], strides = [1, 1, 1]} : vector<1x8x32xf32> to vector<1x8x8xf32>
    %45 = arith.truncf %44 : vector<1x8x8xf32> to vector<1x8x8xbf16>
    %46 = vector.extract_strided_slice %18 {offsets = [0, 0, 8], sizes = [1, 8, 8], strides = [1, 1, 1]} : vector<1x8x32xf32> to vector<1x8x8xf32>
    %47 = arith.truncf %46 : vector<1x8x8xf32> to vector<1x8x8xbf16>
    %48 = vector.extract_strided_slice %20 {offsets = [0, 0, 8], sizes = [1, 8, 8], strides = [1, 1, 1]} : vector<1x8x32xf32> to vector<1x8x8xf32>
    %49 = arith.truncf %48 : vector<1x8x8xf32> to vector<1x8x8xbf16>
    "tpu.trace_start"() <{level = 10 : i32, message = "bld,bsd->bls"}> : () -> ()
    %cst_19 = arith.constant dense<0.000000e+00> : vector<1x8x8xf32>
    %50 = tpu.matmul %45, %47, %cst_19 {dimension_numbers = #tpu.dot_dimension_numbers<[2], [2], [1], [1], [0, 0, 0, 1, 1, 1], [0], [0]>} : vector<1x8x8xbf16>, vector<1x8x8xbf16>, vector<1x8x8xf32> -> vector<1x8x8xf32>
    "tpu.trace_stop"() : () -> ()
    %cst_20 = arith.constant dense<0xFF800000> : vector<1x8xf32>
    %51 = vector.multi_reduction <maximumf>, %50, %cst_20 [2] : vector<1x8x8xf32> to vector<1x8xf32>
    %52 = vector.shape_cast %51 : vector<1x8xf32> to vector<1x8x1xf32>
    %53 = vector.broadcast %52 : vector<1x8x1xf32> to vector<1x8x8xf32>
    %54 = arith.subf %50, %53 : vector<1x8x8xf32>
    %55 = math.exp %54 : vector<1x8x8xf32>
    %cst_21 = arith.constant dense<0.000000e+00> : vector<1x8xf32>
    %56 = vector.multi_reduction <add>, %55, %cst_21 [2] : vector<1x8x8xf32> to vector<1x8xf32>
    %57 = vector.shape_cast %56 : vector<1x8xf32> to vector<1x8x1xf32>
    %58 = tpu.reciprocal %57 {approx = true} : vector<1x8x1xf32> -> vector<1x8x1xf32>
    %59 = arith.mulf %57, %58 : vector<1x8x1xf32>
    %cst_22 = arith.constant 2.000000e+00 : f32
    %60 = vector.broadcast %cst_22 : f32 to vector<1x8x1xf32>
    %61 = arith.subf %60, %59 : vector<1x8x1xf32>
    %62 = arith.mulf %58, %61 : vector<1x8x1xf32>
    %63 = vector.broadcast %62 : vector<1x8x1xf32> to vector<1x8x8xf32>
    %64 = arith.mulf %55, %63 : vector<1x8x8xf32>
    %65 = arith.truncf %64 : vector<1x8x8xf32> to vector<1x8x8xbf16>
    "tpu.trace_start"() <{level = 10 : i32, message = "bls,bsd->bld"}> : () -> ()
    %cst_23 = arith.constant dense<0.000000e+00> : vector<1x8x8xf32>
    %66 = tpu.matmul %65, %49, %cst_23 {dimension_numbers = #tpu.dot_dimension_numbers<[2], [1], [1], [2], [0, 0, 0, 1, 1, 2], [0], [0]>} : vector<1x8x8xbf16>, vector<1x8x8xbf16>, vector<1x8x8xf32> -> vector<1x8x8xf32>
    "tpu.trace_stop"() : () -> ()
    %67 = vector.extract_strided_slice %16 {offsets = [0, 0, 16], sizes = [1, 8, 8], strides = [1, 1, 1]} : vector<1x8x32xf32> to vector<1x8x8xf32>
    %68 = arith.truncf %67 : vector<1x8x8xf32> to vector<1x8x8xbf16>
    %69 = vector.extract_strided_slice %18 {offsets = [0, 0, 16], sizes = [1, 8, 8], strides = [1, 1, 1]} : vector<1x8x32xf32> to vector<1x8x8xf32>
    %70 = arith.truncf %69 : vector<1x8x8xf32> to vector<1x8x8xbf16>
    %71 = vector.extract_strided_slice %20 {offsets = [0, 0, 16], sizes = [1, 8, 8], strides = [1, 1, 1]} : vector<1x8x32xf32> to vector<1x8x8xf32>
    %72 = arith.truncf %71 : vector<1x8x8xf32> to vector<1x8x8xbf16>
    "tpu.trace_start"() <{level = 10 : i32, message = "bld,bsd->bls"}> : () -> ()
    %cst_24 = arith.constant dense<0.000000e+00> : vector<1x8x8xf32>
    %73 = tpu.matmul %68, %70, %cst_24 {dimension_numbers = #tpu.dot_dimension_numbers<[2], [2], [1], [1], [0, 0, 0, 1, 1, 1], [0], [0]>} : vector<1x8x8xbf16>, vector<1x8x8xbf16>, vector<1x8x8xf32> -> vector<1x8x8xf32>
    "tpu.trace_stop"() : () -> ()
    %cst_25 = arith.constant dense<0xFF800000> : vector<1x8xf32>
    %74 = vector.multi_reduction <maximumf>, %73, %cst_25 [2] : vector<1x8x8xf32> to vector<1x8xf32>
    %75 = vector.shape_cast %74 : vector<1x8xf32> to vector<1x8x1xf32>
    %76 = vector.broadcast %75 : vector<1x8x1xf32> to vector<1x8x8xf32>
    %77 = arith.subf %73, %76 : vector<1x8x8xf32>
    %78 = math.exp %77 : vector<1x8x8xf32>
    %cst_26 = arith.constant dense<0.000000e+00> : vector<1x8xf32>
    %79 = vector.multi_reduction <add>, %78, %cst_26 [2] : vector<1x8x8xf32> to vector<1x8xf32>
    %80 = vector.shape_cast %79 : vector<1x8xf32> to vector<1x8x1xf32>
    %81 = tpu.reciprocal %80 {approx = true} : vector<1x8x1xf32> -> vector<1x8x1xf32>
    %82 = arith.mulf %80, %81 : vector<1x8x1xf32>
    %cst_27 = arith.constant 2.000000e+00 : f32
    %83 = vector.broadcast %cst_27 : f32 to vector<1x8x1xf32>
    %84 = arith.subf %83, %82 : vector<1x8x1xf32>
    %85 = arith.mulf %81, %84 : vector<1x8x1xf32>
    %86 = vector.broadcast %85 : vector<1x8x1xf32> to vector<1x8x8xf32>
    %87 = arith.mulf %78, %86 : vector<1x8x8xf32>
    %88 = arith.truncf %87 : vector<1x8x8xf32> to vector<1x8x8xbf16>
    "tpu.trace_start"() <{level = 10 : i32, message = "bls,bsd->bld"}> : () -> ()
    %cst_28 = arith.constant dense<0.000000e+00> : vector<1x8x8xf32>
    %89 = tpu.matmul %88, %72, %cst_28 {dimension_numbers = #tpu.dot_dimension_numbers<[2], [1], [1], [2], [0, 0, 0, 1, 1, 2], [0], [0]>} : vector<1x8x8xbf16>, vector<1x8x8xbf16>, vector<1x8x8xf32> -> vector<1x8x8xf32>
    "tpu.trace_stop"() : () -> ()
    %90 = vector.extract_strided_slice %16 {offsets = [0, 0, 24], sizes = [1, 8, 8], strides = [1, 1, 1]} : vector<1x8x32xf32> to vector<1x8x8xf32>
    %91 = arith.truncf %90 : vector<1x8x8xf32> to vector<1x8x8xbf16>
    %92 = vector.extract_strided_slice %18 {offsets = [0, 0, 24], sizes = [1, 8, 8], strides = [1, 1, 1]} : vector<1x8x32xf32> to vector<1x8x8xf32>
    %93 = arith.truncf %92 : vector<1x8x8xf32> to vector<1x8x8xbf16>
    %94 = vector.extract_strided_slice %20 {offsets = [0, 0, 24], sizes = [1, 8, 8], strides = [1, 1, 1]} : vector<1x8x32xf32> to vector<1x8x8xf32>
    %95 = arith.truncf %94 : vector<1x8x8xf32> to vector<1x8x8xbf16>
    "tpu.trace_start"() <{level = 10 : i32, message = "bld,bsd->bls"}> : () -> ()
    %cst_29 = arith.constant dense<0.000000e+00> : vector<1x8x8xf32>
    %96 = tpu.matmul %91, %93, %cst_29 {dimension_numbers = #tpu.dot_dimension_numbers<[2], [2], [1], [1], [0, 0, 0, 1, 1, 1], [0], [0]>} : vector<1x8x8xbf16>, vector<1x8x8xbf16>, vector<1x8x8xf32> -> vector<1x8x8xf32>
    "tpu.trace_stop"() : () -> ()
    %cst_30 = arith.constant dense<0xFF800000> : vector<1x8xf32>
    %97 = vector.multi_reduction <maximumf>, %96, %cst_30 [2] : vector<1x8x8xf32> to vector<1x8xf32>
    %98 = vector.shape_cast %97 : vector<1x8xf32> to vector<1x8x1xf32>
    %99 = vector.broadcast %98 : vector<1x8x1xf32> to vector<1x8x8xf32>
    %100 = arith.subf %96, %99 : vector<1x8x8xf32>
    %101 = math.exp %100 : vector<1x8x8xf32>
    %cst_31 = arith.constant dense<0.000000e+00> : vector<1x8xf32>
    %102 = vector.multi_reduction <add>, %101, %cst_31 [2] : vector<1x8x8xf32> to vector<1x8xf32>
    %103 = vector.shape_cast %102 : vector<1x8xf32> to vector<1x8x1xf32>
    %104 = tpu.reciprocal %103 {approx = true} : vector<1x8x1xf32> -> vector<1x8x1xf32>
    %105 = arith.mulf %103, %104 : vector<1x8x1xf32>
    %cst_32 = arith.constant 2.000000e+00 : f32
    %106 = vector.broadcast %cst_32 : f32 to vector<1x8x1xf32>
    %107 = arith.subf %106, %105 : vector<1x8x1xf32>
    %108 = arith.mulf %104, %107 : vector<1x8x1xf32>
    %109 = vector.broadcast %108 : vector<1x8x1xf32> to vector<1x8x8xf32>
    %110 = arith.mulf %101, %109 : vector<1x8x8xf32>
    %111 = arith.truncf %110 : vector<1x8x8xf32> to vector<1x8x8xbf16>
    "tpu.trace_start"() <{level = 10 : i32, message = "bls,bsd->bld"}> : () -> ()
    %cst_33 = arith.constant dense<0.000000e+00> : vector<1x8x8xf32>
    %112 = tpu.matmul %111, %95, %cst_33 {dimension_numbers = #tpu.dot_dimension_numbers<[2], [1], [1], [2], [0, 0, 0, 1, 1, 2], [0], [0]>} : vector<1x8x8xbf16>, vector<1x8x8xbf16>, vector<1x8x8xf32> -> vector<1x8x8xf32>
    "tpu.trace_stop"() : () -> ()
    %113 = tpu.concatenate %43, %66, %89, %112 in 2 : vector<1x8x8xf32>, vector<1x8x8xf32>, vector<1x8x8xf32>, vector<1x8x8xf32> -> vector<1x8x32xf32>
    %114 = vector.shape_cast %113 : vector<1x8x32xf32> to vector<8x32xf32>
    %115 = arith.truncf %114 : vector<8x32xf32> to vector<8x32xbf16>
    %c0_34 = arith.constant 0 : index
    %c0_35 = arith.constant 0 : index
    %116 = vector.load %arg7[%c0_34, %c0_35] : memref<32x32xbf16, #tpu.memory_space<vmem>>, vector<32x32xbf16>
    %cst_36 = arith.constant dense<0.000000e+00> : vector<8x32xf32>
    %117 = tpu.matmul %115, %116, %cst_36 {dimension_numbers = #tpu.dot_dimension_numbers<[1], [0], [0], [1], [0, 0, 1, 1], [], []>} : vector<8x32xbf16>, vector<32x32xbf16>, vector<8x32xf32> -> vector<8x32xf32>
    %c0_37 = arith.constant 0 : index
    %c0_38 = arith.constant 0 : index
    %118 = vector.load %arg8[%c0_37, %c0_38] : memref<1x32xf32, #tpu.memory_space<vmem>>, vector<1x32xf32>
    %119 = vector.broadcast %118 : vector<1x32xf32> to vector<8x32xf32>
    %120 = arith.addf %117, %119 : vector<8x32xf32>
    %121 = arith.addf %1, %120 : vector<8x32xf32>
    %cst_39 = arith.constant dense<0.000000e+00> : vector<8xf32>
    %122 = vector.multi_reduction <add>, %121, %cst_39 [1] : vector<8x32xf32> to vector<8xf32>
    %123 = vector.shape_cast %122 : vector<8xf32> to vector<8x1xf32>
    %cst_40 = arith.constant 3.125000e-02 : f32
    %124 = vector.broadcast %cst_40 : f32 to vector<8x1xf32>
    %125 = arith.mulf %123, %124 : vector<8x1xf32>
    %126 = vector.broadcast %125 : vector<8x1xf32> to vector<8x32xf32>
    %127 = arith.subf %121, %126 : vector<8x32xf32>
    %128 = arith.mulf %127, %127 : vector<8x32xf32>
    %cst_41 = arith.constant dense<0.000000e+00> : vector<8xf32>
    %129 = vector.multi_reduction <add>, %128, %cst_41 [1] : vector<8x32xf32> to vector<8xf32>
    %130 = vector.shape_cast %129 : vector<8xf32> to vector<8x1xf32>
    %cst_42 = arith.constant 3.125000e-02 : f32
    %131 = vector.broadcast %cst_42 : f32 to vector<8x1xf32>
    %132 = arith.mulf %130, %131 : vector<8x1xf32>
    %cst_43 = arith.constant 9.99999974E-6 : f32
    %133 = vector.broadcast %cst_43 : f32 to vector<8x1xf32>
    %134 = arith.addf %132, %133 : vector<8x1xf32>
    %135 = math.rsqrt %134 : vector<8x1xf32>
    %136 = vector.broadcast %135 : vector<8x1xf32> to vector<8x32xf32>
    %137 = arith.mulf %127, %136 : vector<8x32xf32>
    %c0_44 = arith.constant 0 : index
    %c0_45 = arith.constant 0 : index
    %138 = vector.load %arg9[%c0_44, %c0_45] : memref<1x32xf32, #tpu.memory_space<vmem>>, vector<1x32xf32>
    %139 = vector.broadcast %138 : vector<1x32xf32> to vector<8x32xf32>
    %140 = arith.mulf %137, %139 : vector<8x32xf32>
    %c0_46 = arith.constant 0 : index
    %c0_47 = arith.constant 0 : index
    %141 = vector.load %arg10[%c0_46, %c0_47] : memref<1x32xf32, #tpu.memory_space<vmem>>, vector<1x32xf32>
    %142 = vector.broadcast %141 : vector<1x32xf32> to vector<8x32xf32>
    %143 = arith.addf %140, %142 : vector<8x32xf32>
    %144 = arith.truncf %143 : vector<8x32xf32> to vector<8x32xbf16>
    %c0_48 = arith.constant 0 : index
    %c0_49 = arith.constant 0 : index
    %145 = vector.load %arg11[%c0_48, %c0_49] : memref<32x64xbf16, #tpu.memory_space<vmem>>, vector<32x64xbf16>
    %cst_50 = arith.constant dense<0.000000e+00> : vector<8x64xf32>
    %146 = tpu.matmul %144, %145, %cst_50 {dimension_numbers = #tpu.dot_dimension_numbers<[1], [0], [0], [1], [0, 0, 1, 1], [], []>} : vector<8x32xbf16>, vector<32x64xbf16>, vector<8x64xf32> -> vector<8x64xf32>
    %c0_51 = arith.constant 0 : index
    %c0_52 = arith.constant 0 : index
    %147 = vector.load %arg12[%c0_51, %c0_52] : memref<1x64xf32, #tpu.memory_space<vmem>>, vector<1x64xf32>
    %148 = vector.broadcast %147 : vector<1x64xf32> to vector<8x64xf32>
    %149 = arith.addf %146, %148 : vector<8x64xf32>
    %cst_53 = arith.constant 0.000000e+00 : f32
    %150 = vector.broadcast %cst_53 : f32 to vector<8x64xf32>
    %151 = arith.maximumf %149, %150 : vector<8x64xf32>
    %152 = arith.truncf %151 : vector<8x64xf32> to vector<8x64xbf16>
    %c0_54 = arith.constant 0 : index
    %c0_55 = arith.constant 0 : index
    %153 = vector.load %arg13[%c0_54, %c0_55] : memref<64x32xbf16, #tpu.memory_space<vmem>>, vector<64x32xbf16>
    %cst_56 = arith.constant dense<0.000000e+00> : vector<8x32xf32>
    %154 = tpu.matmul %152, %153, %cst_56 {dimension_numbers = #tpu.dot_dimension_numbers<[1], [0], [0], [1], [0, 0, 1, 1], [], []>} : vector<8x64xbf16>, vector<64x32xbf16>, vector<8x32xf32> -> vector<8x32xf32>
    %c0_57 = arith.constant 0 : index
    %c0_58 = arith.constant 0 : index
    %155 = vector.load %arg14[%c0_57, %c0_58] : memref<1x32xf32, #tpu.memory_space<vmem>>, vector<1x32xf32>
    %156 = vector.broadcast %155 : vector<1x32xf32> to vector<8x32xf32>
    %157 = arith.addf %154, %156 : vector<8x32xf32>
    %158 = arith.addf %143, %157 : vector<8x32xf32>
    %cst_59 = arith.constant dense<0.000000e+00> : vector<8xf32>
    %159 = vector.multi_reduction <add>, %158, %cst_59 [1] : vector<8x32xf32> to vector<8xf32>
    %160 = vector.shape_cast %159 : vector<8xf32> to vector<8x1xf32>
    %cst_60 = arith.constant 3.125000e-02 : f32
    %161 = vector.broadcast %cst_60 : f32 to vector<8x1xf32>
    %162 = arith.mulf %160, %161 : vector<8x1xf32>
    %163 = vector.broadcast %162 : vector<8x1xf32> to vector<8x32xf32>
    %164 = arith.subf %158, %163 : vector<8x32xf32>
    %165 = arith.mulf %164, %164 : vector<8x32xf32>
    %cst_61 = arith.constant dense<0.000000e+00> : vector<8xf32>
    %166 = vector.multi_reduction <add>, %165, %cst_61 [1] : vector<8x32xf32> to vector<8xf32>
    %167 = vector.shape_cast %166 : vector<8xf32> to vector<8x1xf32>
    %cst_62 = arith.constant 3.125000e-02 : f32
    %168 = vector.broadcast %cst_62 : f32 to vector<8x1xf32>
    %169 = arith.mulf %167, %168 : vector<8x1xf32>
    %cst_63 = arith.constant 9.99999974E-6 : f32
    %170 = vector.broadcast %cst_63 : f32 to vector<8x1xf32>
    %171 = arith.addf %169, %170 : vector<8x1xf32>
    %172 = math.rsqrt %171 : vector<8x1xf32>
    %173 = vector.broadcast %172 : vector<8x1xf32> to vector<8x32xf32>
    %174 = arith.mulf %164, %173 : vector<8x32xf32>
    %c0_64 = arith.constant 0 : index
    %c0_65 = arith.constant 0 : index
    %175 = vector.load %arg15[%c0_64, %c0_65] : memref<1x32xf32, #tpu.memory_space<vmem>>, vector<1x32xf32>
    %176 = vector.broadcast %175 : vector<1x32xf32> to vector<8x32xf32>
    %177 = arith.mulf %174, %176 : vector<8x32xf32>
    %c0_66 = arith.constant 0 : index
    %c0_67 = arith.constant 0 : index
    %178 = vector.load %arg16[%c0_66, %c0_67] : memref<1x32xf32, #tpu.memory_space<vmem>>, vector<1x32xf32>
    %179 = vector.broadcast %178 : vector<1x32xf32> to vector<8x32xf32>
    %180 = arith.addf %177, %179 : vector<8x32xf32>
    %181 = vector.shape_cast %180 : vector<8x32xf32> to vector<1x8x32xf32>
    %c0_68 = arith.constant 0 : index
    %c0_69 = arith.constant 0 : index
    %c0_70 = arith.constant 0 : index
    %182 = vector.load %arg17[%c0_68, %c0_69, %c0_70] : memref<1x8x32xf32, #tpu.memory_space<vmem>>, vector<1x8x32xf32>
    tpu.vector_store %arg17[%c0_68, %c0_69, %c0_70], %181 {strides = array<i32>} : memref<1x8x32xf32, #tpu.memory_space<vmem>>, vector<1x8x32xf32>,
    return
  }
  func.func @transform_0(%arg0: i32) -> (i32, i32, i32) {
    %c0_i32 = arith.constant 0 : i32
    %c0_i32_0 = arith.constant 0 : i32
    %c0_i32_1 = arith.constant 0 : i32
    return %arg0, %c0_i32, %c0_i32_0 : i32, i32, i32
  }
  func.func @transform_1(%arg0: i32) -> (i32, i32, i32) {
    %c0_i32 = arith.constant 0 : i32
    %c0_i32_0 = arith.constant 0 : i32
    %c0_i32_1 = arith.constant 0 : i32
    return %arg0, %c0_i32, %c0_i32_0 : i32, i32, i32
  }
  func.func @transform_2(%arg0: i32) -> (i32, i32) {
    %c0_i32 = arith.constant 0 : i32
    %c0_i32_0 = arith.constant 0 : i32
    %c0_i32_1 = arith.constant 0 : i32
    return %c0_i32, %c0_i32_0 : i32, i32
  }
  func.func @transform_3(%arg0: i32) -> (i32, i32) {
    %c0_i32 = arith.constant 0 : i32
    %c0_i32_0 = arith.constant 0 : i32
    %c0_i32_1 = arith.constant 0 : i32
    return %c0_i32, %c0_i32_0 : i32, i32
  }
  func.func @transform_4(%arg0: i32) -> (i32, i32) {
    %c0_i32 = arith.constant 0 : i32
    %c0_i32_0 = arith.constant 0 : i32
    %c0_i32_1 = arith.constant 0 : i32
    return %c0_i32, %c0_i32_0 : i32, i32
  }
  func.func @transform_5(%arg0: i32) -> (i32, i32) {
    %c0_i32 = arith.constant 0 : i32
    %c0_i32_0 = arith.constant 0 : i32
    %c0_i32_1 = arith.constant 0 : i32
    return %c0_i32, %c0_i32_0 : i32, i32
  }
  func.func @transform_6(%arg0: i32) -> (i32, i32) {
    %c0_i32 = arith.constant 0 : i32
    %c0_i32_0 = arith.constant 0 : i32
    %c0_i32_1 = arith.constant 0 : i32
    return %c0_i32, %c0_i32_0 : i32, i32
  }
  func.func @transform_7(%arg0: i32) -> (i32, i32) {
    %c0_i32 = arith.constant 0 : i32
    %c0_i32_0 = arith.constant 0 : i32
    %c0_i32_1 = arith.constant 0 : i32
    return %c0_i32, %c0_i32_0 : i32, i32
  }
  func.func @transform_8(%arg0: i32) -> (i32, i32) {
    %c0_i32 = arith.constant 0 : i32
    %c0_i32_0 = arith.constant 0 : i32
    %c0_i32_1 = arith.constant 0 : i32
    return %c0_i32, %c0_i32_0 : i32, i32
  }
  func.func @transform_9(%arg0: i32) -> (i32, i32) {
    %c0_i32 = arith.constant 0 : i32
    %c0_i32_0 = arith.constant 0 : i32
    %c0_i32_1 = arith.constant 0 : i32
    return %c0_i32, %c0_i32_0 : i32, i32
  }
  func.func @transform_10(%arg0: i32) -> (i32, i32) {
    %c0_i32 = arith.constant 0 : i32
    %c0_i32_0 = arith.constant 0 : i32
    %c0_i32_1 = arith.constant 0 : i32
    return %c0_i32, %c0_i32_0 : i32, i32
  }
  func.func @transform_11(%arg0: i32) -> (i32, i32) {
    %c0_i32 = arith.constant 0 : i32
    %c0_i32_0 = arith.constant 0 : i32
    %c0_i32_1 = arith.constant 0 : i32
    return %c0_i32, %c0_i32_0 : i32, i32
  }
  func.func @transform_12(%arg0: i32) -> (i32, i32) {
    %c0_i32 = arith.constant 0 : i32
    %c0_i32_0 = arith.constant 0 : i32
    %c0_i32_1 = arith.constant 0 : i32
    return %c0_i32, %c0_i32_0 : i32, i32
  }
  func.func @transform_13(%arg0: i32) -> (i32, i32) {
    %c0_i32 = arith.constant 0 : i32
    %c0_i32_0 = arith.constant 0 : i32
    %c0_i32_1 = arith.constant 0 : i32
    return %c0_i32, %c0_i32_0 : i32, i32
  }
  func.func @transform_14(%arg0: i32) -> (i32, i32) {
    %c0_i32 = arith.constant 0 : i32
    %c0_i32_0 = arith.constant 0 : i32
    %c0_i32_1 = arith.constant 0 : i32
    return %c0_i32, %c0_i32_0 : i32, i32
  }
  func.func @transform_15(%arg0: i32) -> (i32, i32) {
    %c0_i32 = arith.constant 0 : i32
    %c0_i32_0 = arith.constant 0 : i32
    %c0_i32_1 = arith.constant 0 : i32
    return %c0_i32, %c0_i32_0 : i32, i32
  }
  func.func @transform_16(%arg0: i32) -> (i32, i32, i32) {
    %c0_i32 = arith.constant 0 : i32
    %c0_i32_0 = arith.constant 0 : i32
    %c0_i32_1 = arith.constant 0 : i32
    return %arg0, %c0_i32, %c0_i32_0 : i32, i32, i32
  }
}

module attributes {stable_mosaic.version = 11 : i64} {
  func.func @encoder_layer_kernel(%arg0: i32, %arg1: memref<1x8x32xf32, #tpu.memory_space<vmem>>, %arg2: memref<1x8x32xf32, #tpu.memory_space<vmem>>, %arg3: memref<32x32xbf16, #tpu.memory_space<vmem>>, %arg4: memref<1x32xf32, #tpu.memory_space<vmem>>, %arg5: memref<32x64xbf16, #tpu.memory_space<vmem>>, %arg6: memref<1x64xf32, #tpu.memory_space<vmem>>, %arg7: memref<32x32xbf16, #tpu.memory_space<vmem>>, %arg8: memref<1x32xf32, #tpu.memory_space<vmem>>, %arg9: memref<1x32xf32, #tpu.memory_space<vmem>>, %arg10: memref<1x32xf32, #tpu.memory_space<vmem>>, %arg11: memref<32x64xbf16, #tpu.memory_space<vmem>>, %arg12: memref<1x64xf32, #tpu.memory_space<vmem>>, %arg13: memref<64x32xbf16, #tpu.memory_space<vmem>>, %arg14: memref<1x32xf32, #tpu.memory_space<vmem>>, %arg15: memref<1x32xf32, #tpu.memory_space<vmem>>, %arg16: memref<1x32xf32, #tpu.memory_space<vmem>>, %arg17: memref<1x8x32xf32, #tpu.memory_space<vmem>>) attributes {dimension_semantics = [#tpu.dimension_semantics<parallel>], iteration_bounds = array<i64: 2>, scalar_prefetch = 0 : i64, scratch_operands = 0 : i64, tpu.core_type = #tpu.core_type<tc>, window_params = [{transform_indices = @transform_0, window_bounds = array<i64: 1, 8, 32>}, {transform_indices = @transform_1, window_bounds = array<i64: 1, 8, 32>}, {pipeline_mode = #tpu.pipeline_mode<synchronous>, transform_indices = @transform_2, window_bounds = array<i64: 32, 32>}, {pipeline_mode = #tpu.pipeline_mode<synchronous>, transform_indices = @transform_3, window_bounds = array<i64: 1, 32>}, {pipeline_mode = #tpu.pipeline_mode<synchronous>, transform_indices = @transform_4, window_bounds = array<i64: 32, 64>}, {pipeline_mode = #tpu.pipeline_mode<synchronous>, transform_indices = @transform_5, window_bounds = array<i64: 1, 64>}, {pipeline_mode = #tpu.pipeline_mode<synchronous>, transform_indices = @transform_6, window_bounds = array<i64: 32, 32>}, {pipeline_mode = #tpu.pipeline_mode<synchronous>, transform_indices = @transform_7, window_bounds = array<i64: 1, 32>}, {pipeline_mode = #tpu.pipeline_mode<synchronous>, transform_indices = @transform_8, window_bounds = array<i64: 1, 32>}, {pipeline_mode = #tpu.pipeline_mode<synchronous>, transform_indices = @transform_9, window_bounds = array<i64: 1, 32>}, {pipeline_mode = #tpu.pipeline_mode<synchronous>, transform_indices = @transform_10, window_bounds = array<i64: 32, 64>}, {pipeline_mode = #tpu.pipeline_mode<synchronous>, transform_indices = @transform_11, window_bounds = array<i64: 1, 64>}, {pipeline_mode = #tpu.pipeline_mode<synchronous>, transform_indices = @transform_12, window_bounds = array<i64: 64, 32>}, {pipeline_mode = #tpu.pipeline_mode<synchronous>, transform_indices = @transform_13, window_bounds = array<i64: 1, 32>}, {pipeline_mode = #tpu.pipeline_mode<synchronous>, transform_indices = @transform_14, window_bounds = array<i64: 1, 32>}, {pipeline_mode = #tpu.pipeline_mode<synchronous>, transform_indices = @transform_15, window_bounds = array<i64: 1, 32>}, {transform_indices = @transform_16, window_bounds = array<i64: 1, 8, 32>}]} {
    %c0 = arith.constant 0 : index
    %c0_0 = arith.constant 0 : index
    %c0_1 = arith.constant 0 : index
    %0 = vector.load %arg1[%c0, %c0_0, %c0_1] : memref<1x8x32xf32, #tpu.memory_space<vmem>>, vector<1x8x32xf32>
    %1 = vector.shape_cast %0 : vector<1x8x32xf32> to vector<8x32xf32>
    %2 = arith.truncf %1 : vector<8x32xf32> to vector<8x32xbf16>
    %c0_2 = arith.constant 0 : index
    %c0_3 = arith.constant 0 : index
    %c0_4 = arith.constant 0 : index
    %3 = vector.load %arg2[%c0_2, %c0_3, %c0_4] : memref<1x8x32xf32, #tpu.memory_space<vmem>>, vector<1x8x32xf32>
    %4 = vector.shape_cast %3 : vector<1x8x32xf32> to vector<8x32xf32>
    %5 = arith.truncf %4 : vector<8x32xf32> to vector<8x32xbf16>
    %c0_5 = arith.constant 0 : index
    %c0_6 = arith.constant 0 : index
    %6 = vector.load %arg3[%c0_5, %c0_6] : memref<32x32xbf16, #tpu.memory_space<vmem>>, vector<32x32xbf16>
    %cst = arith.constant dense<0.000000e+00> : vector<8x32xf32>
    %7 = tpu.matmul %2, %6, %cst {dimension_numbers = #tpu.dot_dimension_numbers<[1], [0], [0], [1], [0, 0, 1, 1], [], []>} : vector<8x32xbf16>, vector<32x32xbf16>, vector<8x32xf32> -> vector<8x32xf32>
    %c0_7 = arith.constant 0 : index
    %c0_8 = arith.constant 0 : index
    %8 = vector.load %arg4[%c0_7, %c0_8] : memref<1x32xf32, #tpu.memory_space<vmem>>, vector<1x32xf32>
    %9 = vector.broadcast %8 : vector<1x32xf32> to vector<8x32xf32>
    %10 = arith.addf %7, %9 : vector<8x32xf32>
    %c0_9 = arith.constant 0 : index
    %c0_10 = arith.constant 0 : index
    %11 = vector.load %arg5[%c0_9, %c0_10] : memref<32x64xbf16, #tpu.memory_space<vmem>>, vector<32x64xbf16>
    %cst_11 = arith.constant dense<0.000000e+00> : vector<8x64xf32>
    %12 = tpu.matmul %5, %11, %cst_11 {dimension_numbers = #tpu.dot_dimension_numbers<[1], [0], [0], [1], [0, 0, 1, 1], [], []>} : vector<8x32xbf16>, vector<32x64xbf16>, vector<8x64xf32> -> vector<8x64xf32>
    %c0_12 = arith.constant 0 : index
    %c0_13 = arith.constant 0 : index
    %13 = vector.load %arg6[%c0_12, %c0_13] : memref<1x64xf32, #tpu.memory_space<vmem>>, vector<1x64xf32>
    %14 = vector.broadcast %13 : vector<1x64xf32> to vector<8x64xf32>
    %15 = arith.addf %12, %14 : vector<8x64xf32>
    %16 = vector.shape_cast %10 : vector<8x32xf32> to vector<1x8x32xf32>
    %17 = vector.extract_strided_slice %15 {offsets = [0, 0], sizes = [8, 32], strides = [1, 1]} : vector<8x64xf32> to vector<8x32xf32>
    %18 = vector.shape_cast %17 : vector<8x32xf32> to vector<1x8x32xf32>
    %19 = vector.extract_strided_slice %15 {offsets = [0, 32], sizes = [8, 32], strides = [1, 1]} : vector<8x64xf32> to vector<8x32xf32>
    %20 = vector.shape_cast %19 : vector<8x32xf32> to vector<1x8x32xf32>
    %21 = vector.extract_strided_slice %16 {offsets = [0, 0, 0], sizes = [1, 8, 8], strides = [1, 1, 1]} : vector<1x8x32xf32> to vector<1x8x8xf32>
    %22 = arith.truncf %21 : vector<1x8x8xf32> to vector<1x8x8xbf16>
    %23 = vector.extract_strided_slice %18 {offsets = [0, 0, 0], sizes = [1, 8, 8], strides = [1, 1, 1]} : vector<1x8x32xf32> to vector<1x8x8xf32>
    %24 = arith.truncf %23 : vector<1x8x8xf32> to vector<1x8x8xbf16>
    %25 = vector.extract_strided_slice %20 {offsets = [0, 0, 0], sizes = [1, 8, 8], strides = [1, 1, 1]} : vector<1x8x32xf32> to vector<1x8x8xf32>
    %26 = arith.truncf %25 : vector<1x8x8xf32> to vector<1x8x8xbf16>
    "tpu.trace_start"() <{level = 10 : i32, message = "bld,bsd->bls"}> : () -> ()
    %cst_14 = arith.constant dense<0.000000e+00> : vector<1x8x8xf32>
    %27 = tpu.matmul %22, %24, %cst_14 {dimension_numbers = #tpu.dot_dimension_numbers<[2], [2], [1], [1], [0, 0, 0, 1, 1, 1], [0], [0]>} : vector<1x8x8xbf16>, vector<1x8x8xbf16>, vector<1x8x8xf32> -> vector<1x8x8xf32>
    "tpu.trace_stop"() : () -> ()
    %cst_15 = arith.constant dense<0xFF800000> : vector<1x8xf32>
    %28 = vector.multi_reduction <maximumf>, %27, %cst_15 [2] : vector<1x8x8xf32> to vector<1x8xf32>
    %29 = vector.shape_cast %28 : vector<1x8xf32> to vector<1x8x1xf32>
    %30 = vector.broadcast %29 : vector<1x8x1xf32> to vector<1x8x8xf32>
    %31 = arith.subf %27, %30 : vector<1x8x8xf32>
    %32 = math.exp %31 : vector<1x8x8xf32>
    %cst_16 = arith.constant dense<0.000000e+00> : vector<1x8xf32>
    %33 = vector.multi_reduction <add>, %32, %cst_16 [2] : vector<1x8x8xf32> to vector<1x8xf32>
    %34 = vector.shape_cast %33 : vector<1x8xf32> to vector<1x8x1xf32>
    %35 = tpu.reciprocal %34 {approx = true} : vector<1x8x1xf32> -> vector<1x8x1xf32>
    %36 = arith.mulf %34, %35 : vector<1x8x1xf32>
    %cst_17 = arith.constant 2.000000e+00 : f32
    %37 = vector.broadcast %cst_17 : f32 to vector<1x8x1xf32>
    %38 = arith.subf %37, %36 : vector<1x8x1xf32>
    %39 = arith.mulf %35, %38 : vector<1x8x1xf32>
    %40 = vector.broadcast %39 : vector<1x8x1xf32> to vector<1x8x8xf32>
    %41 = arith.mulf %32, %40 : vector<1x8x8xf32>
    %42 = arith.truncf %41 : vector<1x8x8xf32> to vector<1x8x8xbf16>
    "tpu.trace_start"() <{level = 10 : i32, message = "bls,bsd->bld"}> : () -> ()
    %cst_18 = arith.constant dense<0.000000e+00> : vector<1x8x8xf32>
    %43 = tpu.matmul %42, %26, %cst_18 {dimension_numbers = #tpu.dot_dimension_numbers<[2], [1], [1], [2], [0, 0, 0, 1, 1, 2], [0], [0]>} : vector<1x8x8xbf16>, vector<1x8x8xbf16>, vector<1x8x8xf32> -> vector<1x8x8xf32>
    "tpu.trace_stop"() : () -> ()
    %44 = vector.extract_strided_slice %16 {offsets = [0, 0, 8], sizes = [1, 8, 8], strides = [1, 1, 1]} : vector<1x8x32xf32> to vector<1x8x8xf32>
    %45 = arith.truncf %44 : vector<1x8x8xf32> to vector<1x8x8xbf16>
    %46 = vector.extract_strided_slice %18 {offsets = [0, 0, 8], sizes = [1, 8, 8], strides = [1, 1, 1]} : vector<1x8x32xf32> to vector<1x8x8xf32>
    %47 = arith.truncf %46 : vector<1x8x8xf32> to vector<1x8x8xbf16>
    %48 = vector.extract_strided_slice %20 {offsets = [0, 0, 8], sizes = [1, 8, 8], strides = [1, 1, 1]} : vector<1x8x32xf32> to vector<1x8x8xf32>
    %49 = arith.truncf %48 : vector<1x8x8xf32> to vector<1x8x8xbf16>
    "tpu.trace_start"() <{level = 10 : i32, message = "bld,bsd->bls"}> : () -> ()
    %cst_19 = arith.constant dense<0.000000e+00> : vector<1x8x8xf32>
    %50 = tpu.matmul %45, %47, %cst_19 {dimension_numbers = #tpu.dot_dimension_numbers<[2], [2], [1], [1], [0, 0, 0, 1, 1, 1], [0], [0]>} : vector<1x8x8xbf16>, vector<1x8x8xbf16>, vector<1x8x8xf32> -> vector<1x8x8xf32>
    "tpu.trace_stop"() : () -> ()
    %cst_20 = arith.constant dense<0xFF800000> : vector<1x8xf32>
    %51 = vector.multi_reduction <maximumf>, %50, %cst_20 [2] : vector<1x8x8xf32> to vector<1x8xf32>
    %52 = vector.shape_cast %51 : vector<1x8xf32> to vector<1x8x1xf32>
    %53 = vector.broadcast %52 : vector<1x8x1xf32> to vector<1x8x8xf32>
    %54 = arith.subf %50, %53 : vector<1x8x8xf32>
    %55 = math.exp %54 : vector<1x8x8xf32>
    %cst_21 = arith.constant dense<0.000000e+00> : vector<1x8xf32>
    %56 = vector.multi_reduction <add>, %55, %cst_21 [2] : vector<1x8x8xf32> to vector<1x8xf32>
    %57 = vector.shape_cast %56 : vector<1x8xf32> to vector<1x8x1xf32>
    %58 = tpu.reciprocal %57 {approx = true} : vector<1x8x1xf32> -> vector<1x8x1xf32>
    %59 = arith.mulf %57, %58 : vector<1x8x1xf32>
    %cst_22 = arith.constant 2.000000e+00 : f32
    %60 = vector.broadcast %cst_22 : f32 to vector<1x8x1xf32>
    %61 = arith.subf %60, %59 : vector<1x8x1xf32>
    %62 = arith.mulf %58, %61 : vector<1x8x1xf32>
    %63 = vector.broadcast %62 : vector<1x8x1xf32> to vector<1x8x8xf32>
    %64 = arith.mulf %55, %63 : vector<1x8x8xf32>
    %65 = arith.truncf %64 : vector<1x8x8xf32> to vector<1x8x8xbf16>
    "tpu.trace_start"() <{level = 10 : i32, message = "bls,bsd->bld"}> : () -> ()
    %cst_23 = arith.constant dense<0.000000e+00> : vector<1x8x8xf32>
    %66 = tpu.matmul %65, %49, %cst_23 {dimension_numbers = #tpu.dot_dimension_numbers<[2], [1], [1], [2], [0, 0, 0, 1, 1, 2], [0], [0]>} : vector<1x8x8xbf16>, vector<1x8x8xbf16>, vector<1x8x8xf32> -> vector<1x8x8xf32>
    "tpu.trace_stop"() : () -> ()
    %67 = vector.extract_strided_slice %16 {offsets = [0, 0, 16], sizes = [1, 8, 8], strides = [1, 1, 1]} : vector<1x8x32xf32> to vector<1x8x8xf32>
    %68 = arith.truncf %67 : vector<1x8x8xf32> to vector<1x8x8xbf16>
    %69 = vector.extract_strided_slice %18 {offsets = [0, 0, 16], sizes = [1, 8, 8], strides = [1, 1, 1]} : vector<1x8x32xf32> to vector<1x8x8xf32>
    %70 = arith.truncf %69 : vector<1x8x8xf32> to vector<1x8x8xbf16>
    %71 = vector.extract_strided_slice %20 {offsets = [0, 0, 16], sizes = [1, 8, 8], strides = [1, 1, 1]} : vector<1x8x32xf32> to vector<1x8x8xf32>
    %72 = arith.truncf %71 : vector<1x8x8xf32> to vector<1x8x8xbf16>
    "tpu.trace_start"() <{level = 10 : i32, message = "bld,bsd->bls"}> : () -> ()
    %cst_24 = arith.constant dense<0.000000e+00> : vector<1x8x8xf32>
    %73 = tpu.matmul %68, %70, %cst_24 {dimension_numbers = #tpu.dot_dimension_numbers<[2], [2], [1], [1], [0, 0, 0, 1, 1, 1], [0], [0]>} : vector<1x8x8xbf16>, vector<1x8x8xbf16>, vector<1x8x8xf32> -> vector<1x8x8xf32>
    "tpu.trace_stop"() : () -> ()
    %cst_25 = arith.constant dense<0xFF800000> : vector<1x8xf32>
    %74 = vector.multi_reduction <maximumf>, %73, %cst_25 [2] : vector<1x8x8xf32> to vector<1x8xf32>
    %75 = vector.shape_cast %74 : vector<1x8xf32> to vector<1x8x1xf32>
    %76 = vector.broadcast %75 : vector<1x8x1xf32> to vector<1x8x8xf32>
    %77 = arith.subf %73, %76 : vector<1x8x8xf32>
    %78 = math.exp %77 : vector<1x8x8xf32>
    %cst_26 = arith.constant dense<0.000000e+00> : vector<1x8xf32>
    %79 = vector.multi_reduction <add>, %78, %cst_26 [2] : vector<1x8x8xf32> to vector<1x8xf32>
    %80 = vector.shape_cast %79 : vector<1x8xf32> to vector<1x8x1xf32>
    %81 = tpu.reciprocal %80 {approx = true} : vector<1x8x1xf32> -> vector<1x8x1xf32>
    %82 = arith.mulf %80, %81 : vector<1x8x1xf32>
    %cst_27 = arith.constant 2.000000e+00 : f32
    %83 = vector.broadcast %cst_27 : f32 to vector<1x8x1xf32>
    %84 = arith.subf %83, %82 : vector<1x8x1xf32>
    %85 = arith.mulf %81, %84 : vector<1x8x1xf32>
    %86 = vector.broadcast %85 : vector<1x8x1xf32> to vector<1x8x8xf32>
    %87 = arith.mulf %78, %86 : vector<1x8x8xf32>
    %88 = arith.truncf %87 : vector<1x8x8xf32> to vector<1x8x8xbf16>
    "tpu.trace_start"() <{level = 10 : i32, message = "bls,bsd->bld"}> : () -> ()
    %cst_28 = arith.constant dense<0.000000e+00> : vector<1x8x8xf32>
    %89 = tpu.matmul %88, %72, %cst_28 {dimension_numbers = #tpu.dot_dimension_numbers<[2], [1], [1], [2], [0, 0, 0, 1, 1, 2], [0], [0]>} : vector<1x8x8xbf16>, vector<1x8x8xbf16>, vector<1x8x8xf32> -> vector<1x8x8xf32>
    "tpu.trace_stop"() : () -> ()
    %90 = vector.extract_strided_slice %16 {offsets = [0, 0, 24], sizes = [1, 8, 8], strides = [1, 1, 1]} : vector<1x8x32xf32> to vector<1x8x8xf32>
    %91 = arith.truncf %90 : vector<1x8x8xf32> to vector<1x8x8xbf16>
    %92 = vector.extract_strided_slice %18 {offsets = [0, 0, 24], sizes = [1, 8, 8], strides = [1, 1, 1]} : vector<1x8x32xf32> to vector<1x8x8xf32>
    %93 = arith.truncf %92 : vector<1x8x8xf32> to vector<1x8x8xbf16>
    %94 = vector.extract_strided_slice %20 {offsets = [0, 0, 24], sizes = [1, 8, 8], strides = [1, 1, 1]} : vector<1x8x32xf32> to vector<1x8x8xf32>
    %95 = arith.truncf %94 : vector<1x8x8xf32> to vector<1x8x8xbf16>
    "tpu.trace_start"() <{level = 10 : i32, message = "bld,bsd->bls"}> : () -> ()
    %cst_29 = arith.constant dense<0.000000e+00> : vector<1x8x8xf32>
    %96 = tpu.matmul %91, %93, %cst_29 {dimension_numbers = #tpu.dot_dimension_numbers<[2], [2], [1], [1], [0, 0, 0, 1, 1, 1], [0], [0]>} : vector<1x8x8xbf16>, vector<1x8x8xbf16>, vector<1x8x8xf32> -> vector<1x8x8xf32>
    "tpu.trace_stop"() : () -> ()
    %cst_30 = arith.constant dense<0xFF800000> : vector<1x8xf32>
    %97 = vector.multi_reduction <maximumf>, %96, %cst_30 [2] : vector<1x8x8xf32> to vector<1x8xf32>
    %98 = vector.shape_cast %97 : vector<1x8xf32> to vector<1x8x1xf32>
    %99 = vector.broadcast %98 : vector<1x8x1xf32> to vector<1x8x8xf32>
    %100 = arith.subf %96, %99 : vector<1x8x8xf32>
    %101 = math.exp %100 : vector<1x8x8xf32>
    %cst_31 = arith.constant dense<0.000000e+00> : vector<1x8xf32>
    %102 = vector.multi_reduction <add>, %101, %cst_31 [2] : vector<1x8x8xf32> to vector<1x8xf32>
    %103 = vector.shape_cast %102 : vector<1x8xf32> to vector<1x8x1xf32>
    %104 = tpu.reciprocal %103 {approx = true} : vector<1x8x1xf32> -> vector<1x8x1xf32>
    %105 = arith.mulf %103, %104 : vector<1x8x1xf32>
    %cst_32 = arith.constant 2.000000e+00 : f32
    %106 = vector.broadcast %cst_32 : f32 to vector<1x8x1xf32>
    %107 = arith.subf %106, %105 : vector<1x8x1xf32>
    %108 = arith.mulf %104, %107 : vector<1x8x1xf32>
    %109 = vector.broadcast %108 : vector<1x8x1xf32> to vector<1x8x8xf32>
    %110 = arith.mulf %101, %109 : vector<1x8x8xf32>
    %111 = arith.truncf %110 : vector<1x8x8xf32> to vector<1x8x8xbf16>
    "tpu.trace_start"() <{level = 10 : i32, message = "bls,bsd->bld"}> : () -> ()
    %cst_33 = arith.constant dense<0.000000e+00> : vector<1x8x8xf32>
    %112 = tpu.matmul %111, %95, %cst_33 {dimension_numbers = #tpu.dot_dimension_numbers<[2], [1], [1], [2], [0, 0, 0, 1, 1, 2], [0], [0]>} : vector<1x8x8xbf16>, vector<1x8x8xbf16>, vector<1x8x8xf32> -> vector<1x8x8xf32>
    "tpu.trace_stop"() : () -> ()
    %113 = tpu.concatenate %43, %66, %89, %112 in 2 : vector<1x8x8xf32>, vector<1x8x8xf32>, vector<1x8x8xf32>, vector<1x8x8xf32> -> vector<1x8x32xf32>
    %114 = vector.shape_cast %113 : vector<1x8x32xf32> to vector<8x32xf32>
    %115 = arith.truncf %114 : vector<8x32xf32> to vector<8x32xbf16>
    %c0_34 = arith.constant 0 : index
    %c0_35 = arith.constant 0 : index
    %116 = vector.load %arg7[%c0_34, %c0_35] : memref<32x32xbf16, #tpu.memory_space<vmem>>, vector<32x32xbf16>
    %cst_36 = arith.constant dense<0.000000e+00> : vector<8x32xf32>
    %117 = tpu.matmul %115, %116, %cst_36 {dimension_numbers = #tpu.dot_dimension_numbers<[1], [0], [0], [1], [0, 0, 1, 1], [], []>} : vector<8x32xbf16>, vector<32x32xbf16>, vector<8x32xf32> -> vector<8x32xf32>
    %c0_37 = arith.constant 0 : index
    %c0_38 = arith.constant 0 : index
    %118 = vector.load %arg8[%c0_37, %c0_38] : memref<1x32xf32, #tpu.memory_space<vmem>>, vector<1x32xf32>
    %119 = vector.broadcast %118 : vector<1x32xf32> to vector<8x32xf32>
    %120 = arith.addf %117, %119 : vector<8x32xf32>
    %121 = arith.addf %1, %120 : vector<8x32xf32>
    %cst_39 = arith.constant dense<0.000000e+00> : vector<8xf32>
    %122 = vector.multi_reduction <add>, %121, %cst_39 [1] : vector<8x32xf32> to vector<8xf32>
    %123 = vector.shape_cast %122 : vector<8xf32> to vector<8x1xf32>
    %cst_40 = arith.constant 3.125000e-02 : f32
    %124 = vector.broadcast %cst_40 : f32 to vector<8x1xf32>
    %125 = arith.mulf %123, %124 : vector<8x1xf32>
    %126 = vector.broadcast %125 : vector<8x1xf32> to vector<8x32xf32>
    %127 = arith.subf %121, %126 : vector<8x32xf32>
    %128 = arith.mulf %127, %127 : vector<8x32xf32>
    %cst_41 = arith.constant dense<0.000000e+00> : vector<8xf32>
    %129 = vector.multi_reduction <add>, %128, %cst_41 [1] : vector<8x32xf32> to vector<8xf32>
    %130 = vector.shape_cast %129 : vector<8xf32> to vector<8x1xf32>
    %cst_42 = arith.constant 3.125000e-02 : f32
    %131 = vector.broadcast %cst_42 : f32 to vector<8x1xf32>
    %132 = arith.mulf %130, %131 : vector<8x1xf32>
    %cst_43 = arith.constant 9.99999974E-6 : f32
    %133 = vector.broadcast %cst_43 : f32 to vector<8x1xf32>
    %134 = arith.addf %132, %133 : vector<8x1xf32>
    %135 = math.rsqrt %134 : vector<8x1xf32>
    %136 = vector.broadcast %135 : vector<8x1xf32> to vector<8x32xf32>
    %137 = arith.mulf %127, %136 : vector<8x32xf32>
    %c0_44 = arith.constant 0 : index
    %c0_45 = arith.constant 0 : index
    %138 = vector.load %arg9[%c0_44, %c0_45] : memref<1x32xf32, #tpu.memory_space<vmem>>, vector<1x32xf32>
    %139 = vector.broadcast %138 : vector<1x32xf32> to vector<8x32xf32>
    %140 = arith.mulf %137, %139 : vector<8x32xf32>
    %c0_46 = arith.constant 0 : index
    %c0_47 = arith.constant 0 : index
    %141 = vector.load %arg10[%c0_46, %c0_47] : memref<1x32xf32, #tpu.memory_space<vmem>>, vector<1x32xf32>
    %142 = vector.broadcast %141 : vector<1x32xf32> to vector<8x32xf32>
    %143 = arith.addf %140, %142 : vector<8x32xf32>
    %144 = arith.truncf %143 : vector<8x32xf32> to vector<8x32xbf16>
    %c0_48 = arith.constant 0 : index
    %c0_49 = arith.constant 0 : index
    %145 = vector.load %arg11[%c0_48, %c0_49] : memref<32x64xbf16, #tpu.memory_space<vmem>>, vector<32x64xbf16>
    %cst_50 = arith.constant dense<0.000000e+00> : vector<8x64xf32>
    %146 = tpu.matmul %144, %145, %cst_50 {dimension_numbers = #tpu.dot_dimension_numbers<[1], [0], [0], [1], [0, 0, 1, 1], [], []>} : vector<8x32xbf16>, vector<32x64xbf16>, vector<8x64xf32> -> vector<8x64xf32>
    %c0_51 = arith.constant 0 : index
    %c0_52 = arith.constant 0 : index
    %147 = vector.load %arg12[%c0_51, %c0_52] : memref<1x64xf32, #tpu.memory_space<vmem>>, vector<1x64xf32>
    %148 = vector.broadcast %147 : vector<1x64xf32> to vector<8x64xf32>
    %149 = arith.addf %146, %148 : vector<8x64xf32>
    %cst_53 = arith.constant 0.000000e+00 : f32
    %150 = vector.broadcast %cst_53 : f32 to vector<8x64xf32>
    %151 = arith.maximumf %149, %150 : vector<8x64xf32>
    %152 = arith.truncf %151 : vector<8x64xf32> to vector<8x64xbf16>
    %c0_54 = arith.constant 0 : index
    %c0_55 = arith.constant 0 : index
    %153 = vector.load %arg13[%c0_54, %c0_55] : memref<64x32xbf16, #tpu.memory_space<vmem>>, vector<64x32xbf16>
    %cst_56 = arith.constant dense<0.000000e+00> : vector<8x32xf32>
    %154 = tpu.matmul %152, %153, %cst_56 {dimension_numbers = #tpu.dot_dimension_numbers<[1], [0], [0], [1], [0, 0, 1, 1], [], []>} : vector<8x64xbf16>, vector<64x32xbf16>, vector<8x32xf32> -> vector<8x32xf32>
    %c0_57 = arith.constant 0 : index
    %c0_58 = arith.constant 0 : index
    %155 = vector.load %arg14[%c0_57, %c0_58] : memref<1x32xf32, #tpu.memory_space<vmem>>, vector<1x32xf32>
    %156 = vector.broadcast %155 : vector<1x32xf32> to vector<8x32xf32>
    %157 = arith.addf %154, %156 : vector<8x32xf32>
    %158 = arith.addf %143, %157 : vector<8x32xf32>
    %cst_59 = arith.constant dense<0.000000e+00> : vector<8xf32>
    %159 = vector.multi_reduction <add>, %158, %cst_59 [1] : vector<8x32xf32> to vector<8xf32>
    %160 = vector.shape_cast %159 : vector<8xf32> to vector<8x1xf32>
    %cst_60 = arith.constant 3.125000e-02 : f32
    %161 = vector.broadcast %cst_60 : f32 to vector<8x1xf32>
    %162 = arith.mulf %160, %161 : vector<8x1xf32>
    %163 = vector.broadcast %162 : vector<8x1xf32> to vector<8x32xf32>
    %164 = arith.subf %158, %163 : vector<8x32xf32>
    %165 = arith.mulf %164, %164 : vector<8x32xf32>
    %cst_61 = arith.constant dense<0.000000e+00> : vector<8xf32>
    %166 = vector.multi_reduction <add>, %165, %cst_61 [1] : vector<8x32xf32> to vector<8xf32>
    %167 = vector.shape_cast %166 : vector<8xf32> to vector<8x1xf32>
    %cst_62 = arith.constant 3.125000e-02 : f32
    %168 = vector.broadcast %cst_62 : f32 to vector<8x1xf32>
    %169 = arith.mulf %167, %168 : vector<8x1xf32>
    %cst_63 = arith.constant 9.99999974E-6 : f32
    %170 = vector.broadcast %cst_63 : f32 to vector<8x1xf32>
    %171 = arith.addf %169, %170 : vector<8x1xf32>
    %172 = math.rsqrt %171 : vector<8x1xf32>
    %173 = vector.broadcast %172 : vector<8x1xf32> to vector<8x32xf32>
    %174 = arith.mulf %164, %173 : vector<8x32xf32>
    %c0_64 = arith.constant 0 : index
    %c0_65 = arith.constant 0 : index
    %175 = vector.load %arg15[%c0_64, %c0_65] : memref<1x32xf32, #tpu.memory_space<vmem>>, vector<1x32xf32>
    %176 = vector.broadcast %175 : vector<1x32xf32> to vector<8x32xf32>
    %177 = arith.mulf %174, %176 : vector<8x32xf32>
    %c0_66 = arith.constant 0 : index
    %c0_67 = arith.constant 0 : index
    %178 = vector.load %arg16[%c0_66, %c0_67] : memref<1x32xf32, #tpu.memory_space<vmem>>, vector<1x32xf32>
    %179 = vector.broadcast %178 : vector<1x32xf32> to vector<8x32xf32>
    %180 = arith.addf %177, %179 : vector<8x32xf32>
    %181 = vector.shape_cast %180 : vector<8x32xf32> to vector<1x8x32xf32>
    %c0_68 = arith.constant 0 : index
    %c0_69 = arith.constant 0 : index
    %c0_70 = arith.constant 0 : index
    %182 = vector.load %arg17[%c0_68, %c0_69, %c0_70] : memref<1x8x32xf32, #tpu.memory_space<vmem>>, vector<1x8x32xf32>
    tpu.vector_store %arg17[%c0_68, %c0_69, %c0_70], %181 {strides = array<i32>} : memref<1x8x32xf32, #tpu.memory_space<vmem>>, vector<1x8x32xf32>,
    return
  }
  func.func @transform_0(%arg0: i32) -> (i32, i32, i32) {
    %c0_i32 = arith.constant 0 : i32
    %c0_i32_0 = arith.constant 0 : i32
    %c0_i32_1 = arith.constant 0 : i32
    return %arg0, %c0_i32, %c0_i32_0 : i32, i32, i32
  }
  func.func @transform_1(%arg0: i32) -> (i32, i32, i32) {
    %c0_i32 = arith.constant 0 : i32
    %c0_i32_0 = arith.constant 0 : i32
    %c0_i32_1 = arith.constant 0 : i32
    return %arg0, %c0_i32, %c0_i32_0 : i32, i32, i32
  }
  func.func @transform_2(%arg0: i32) -> (i32, i32) {
    %c0_i32 = arith.constant 0 : i32
    %c0_i32_0 = arith.constant 0 : i32
    %c0_i32_1 = arith.constant 0 : i32
    return %c0_i32, %c0_i32_0 : i32, i32
  }
  func.func @transform_3(%arg0: i32) -> (i32, i32) {
    %c0_i32 = arith.constant 0 : i32
    %c0_i32_0 = arith.constant 0 : i32
    %c0_i32_1 = arith.constant 0 : i32
    return %c0_i32, %c0_i32_0 : i32, i32
  }
  func.func @transform_4(%arg0: i32) -> (i32, i32) {
    %c0_i32 = arith.constant 0 : i32
    %c0_i32_0 = arith.constant 0 : i32
    %c0_i32_1 = arith.constant 0 : i32
    return %c0_i32, %c0_i32_0 : i32, i32
  }
  func.func @transform_5(%arg0: i32) -> (i32, i32) {
    %c0_i32 = arith.constant 0 : i32
    %c0_i32_0 = arith.constant 0 : i32
    %c0_i32_1 = arith.constant 0 : i32
    return %c0_i32, %c0_i32_0 : i32, i32
  }
  func.func @transform_6(%arg0: i32) -> (i32, i32) {
    %c0_i32 = arith.constant 0 : i32
    %c0_i32_0 = arith.constant 0 : i32
    %c0_i32_1 = arith.constant 0 : i32
    return %c0_i32, %c0_i32_0 : i32, i32
  }
  func.func @transform_7(%arg0: i32) -> (i32, i32) {
    %c0_i32 = arith.constant 0 : i32
    %c0_i32_0 = arith.constant 0 : i32
    %c0_i32_1 = arith.constant 0 : i32
    return %c0_i32, %c0_i32_0 : i32, i32
  }
  func.func @transform_8(%arg0: i32) -> (i32, i32) {
    %c0_i32 = arith.constant 0 : i32
    %c0_i32_0 = arith.constant 0 : i32
    %c0_i32_1 = arith.constant 0 : i32
    return %c0_i32, %c0_i32_0 : i32, i32
  }
  func.func @transform_9(%arg0: i32) -> (i32, i32) {
    %c0_i32 = arith.constant 0 : i32
    %c0_i32_0 = arith.constant 0 : i32
    %c0_i32_1 = arith.constant 0 : i32
    return %c0_i32, %c0_i32_0 : i32, i32
  }
  func.func @transform_10(%arg0: i32) -> (i32, i32) {
    %c0_i32 = arith.constant 0 : i32
    %c0_i32_0 = arith.constant 0 : i32
    %c0_i32_1 = arith.constant 0 : i32
    return %c0_i32, %c0_i32_0 : i32, i32
  }
  func.func @transform_11(%arg0: i32) -> (i32, i32) {
    %c0_i32 = arith.constant 0 : i32
    %c0_i32_0 = arith.constant 0 : i32
    %c0_i32_1 = arith.constant 0 : i32
    return %c0_i32, %c0_i32_0 : i32, i32
  }
  func.func @transform_12(%arg0: i32) -> (i32, i32) {
    %c0_i32 = arith.constant 0 : i32
    %c0_i32_0 = arith.constant 0 : i32
    %c0_i32_1 = arith.constant 0 : i32
    return %c0_i32, %c0_i32_0 : i32, i32
  }
  func.func @transform_13(%arg0: i32) -> (i32, i32) {
    %c0_i32 = arith.constant 0 : i32
    %c0_i32_0 = arith.constant 0 : i32
    %c0_i32_1 = arith.constant 0 : i32
    return %c0_i32, %c0_i32_0 : i32, i32
  }
  func.func @transform_14(%arg0: i32) -> (i32, i32) {
    %c0_i32 = arith.constant 0 : i32
    %c0_i32_0 = arith.constant 0 : i32
    %c0_i32_1 = arith.constant 0 : i32
    return %c0_i32, %c0_i32_0 : i32, i32
  }
  func.func @transform_15(%arg0: i32) -> (i32, i32) {
    %c0_i32 = arith.constant 0 : i32
    %c0_i32_0 = arith.constant 0 : i32
    %c0_i32_1 = arith.constant 0 : i32
    return %c0_i32, %c0_i32_0 : i32, i32
  }
  func.func @transform_16(%arg0: i32) -> (i32, i32, i32) {
    %c0_i32 = arith.constant 0 : i32
    %c0_i32_0 = arith.constant 0 : i32
    %c0_i32_1 = arith.constant 0 : i32
    return %arg0, %c0_i32, %c0_i32_0 : i32, i32, i32
  }
}

</mosaic_0001>

<bundles_post_ra>
// kernel: tpu_custom_call.1
= control target key start
LH: loop header
LB: loop body
LE: loop exit
PB: predicated region body
PF: predicated region fallthrough
CT: control target
= control target key end

     0   :  { %s1920_s0 = inlined_call_operand.vmem [shape: f32[2,8,32], index: 0, kind: input, shape index: {}]   ;;  %s1921_s1 = inlined_call_operand.vmem [shape: f32[2,8,32], index: 1, kind: input, shape index: {}]   ;;  %s1922_s2 = inlined_call_operand.vmem [shape: bf16[32,32], index: 2, kind: input, shape index: {}]   ;;  %s1923_s3 = inlined_call_operand.vmem [shape: f32[1,32], index: 3, kind: input, shape index: {}]   ;;  %s1924_s4 = inlined_call_operand.hbm [shape: bf16[32,64], index: 4, kind: input, shape index: {}]   ;;  %s1925_s5 = inlined_call_operand.vmem [shape: f32[1,64], index: 5, kind: input, shape index: {}]   ;;  %s1926_s6 = inlined_call_operand.hbm [shape: bf16[32,32], index: 6, kind: input, shape index: {}]   ;;  %s1927_s7 = inlined_call_operand.vmem [shape: f32[1,32], index: 7, kind: input, shape index: {}]   ;;  %s1928_s8 = inlined_call_operand.vmem [shape: f32[1,32], index: 8, kind: input, shape index: {}]   ;;  %s1929_s9 = inlined_call_operand.vmem [shape: f32[1,32], index: 9, kind: input, shape index: {}]   ;;  %s1930_s10 = inlined_call_operand.hbm [shape: bf16[32,64], index: 10, kind: input, shape index: {}]   ;;  %s1931_s11 = inlined_call_operand.vmem [shape: f32[1,64], index: 11, kind: input, shape index: {}]   ;;  %s1932_s12 = inlined_call_operand.vmem [shape: bf16[64,32], index: 12, kind: input, shape index: {}]   ;;  %s1933_s13 = inlined_call_operand.vmem [shape: f32[1,32], index: 13, kind: input, shape index: {}]   ;;  %s1934_s14 = inlined_call_operand.vmem [shape: f32[1,32], index: 14, kind: input, shape index: {}]   ;;  %s1935_s15 = inlined_call_operand.vmem [shape: f32[1,32], index: 15, kind: input, shape index: {}]   ;;  %s1936_s16 = inlined_call_operand.hbm [shape: f32[2,8,32], index: 16, kind: output, shape index: {}]  }
   0x1   :  { %1945 = sst [smem:[#allocation19_spill]] %s1920_s0 }
   0x2   :  { %1946 = sst [smem:[#allocation20_spill]] %s1924_s4 }
   0x3   :  { %1947 = sst [smem:[#allocation21_spill]] %s1926_s6 }
   0x4   :  { %21 = vsyncpa [#allocation3], 0 }
   0x5   :  { %22 = vsyncpa [#allocation6], 0 }
   0x6   :  { %23 = vsyncpa [#allocation4], 0 }
   0x7   :  { %25 = vsyncpa [#allocation4 + $0x1], 0  ;;  %s1698_s21 = smov 0   ;;  %s1700_s22 = smov 0  }
   0x8   :  { %s1702_s23 = smov 0   ;;  %s1704_s24 = smov 0  }
   0x9 LB: > { %1948 = sst [smem:[#allocation12_spill]] %s1584_s21  ;;  %s1719_s25 = sadd.s32 4294967295, %s1596_s24   ;;  %s1596_s24 = sphi %s1704_s24, %s1966_s24   ;;  %s1592_s23 = sphi %s1702_s23, %s1968_s23   ;;  %s1588_s22 = sphi %s1700_s22, %s1970_s22   ;;  %s1584_s21 = sphi %s1698_s21, %s1969_s21  }
   0xa   : > { %1949 = sst [smem:[#allocation13_spill]] %s1592_s23  ;;  %s1235_s26 = sadd.s32 4294967294, %s1596_s24  }
   0xb   : > { %1950 = sst [smem:[#allocation14_spill]] %s1596_s24  ;;  %s1723_s27 = sadd.s32 1, %s1596_s24  }
   0xc   : > { %1951 = sst [smem:[#allocation15_spill]] %s1723_s27  ;;  %s384_s28 = sadd.s32 1, %s1592_s23 }
   0xd   : > { %s381_s29 = ssub.s32 %s1596_s24, %s1723_s27  ;;  %p394_p0 = scmp.ne.s32.totalorder %s1592_s23, %s1588_s22 }
   0xe   : > { %p382_p1 = scmp.eq.s32.totalorder %s381_s29, 0  ;;  %p395_p2 = scmp.eq.s32.totalorder %s1719_s25, 1 }
   0xf   : > { %p400_p3 = scmp.ne.s32.totalorder %s1588_s22, %s1584_s21  ;;  %p401_p4 = scmp.eq.s32.totalorder %s1235_s26, 1 }
  0x10   : > { %s1734_s30 = scalar_select %p382_p1, %s1592_s23, %s384_s28  }
  0x11   : > { %p1736_p5 = por %p395_p2, %p394_p0  ;;  %p1740_p6 = por %p401_p4, %p400_p3 }
  0x12   : > { %1952 = sst [smem:[#allocation16_spill]] %s1734_s30  ;;  %p1236_p7 = scmp.ge.s32.totalorder %s1596_s24, 1 }
  0x13   : > { %s1953_s0 = scalar_select %p1736_p5, 1, 0 }
  0x14   : > { %s1955_s17 = scalar_select %p1740_p6, 1, 0 }
  0x15   : > { %1954 = sst [smem:[#allocation17_spill]] %s1953_s0  ;;  %p408_p8 = scmp.lt.s32.totalorder %s1596_s24, 3 }
  0x16   : > { %1956 = sst [smem:[#allocation18_spill]] %s1955_s17  ;;  %p1353_p9 = scmp.eq.s32.totalorder %s1719_s25, 0 }
  0x17   : > { %p1747_p10 = pnand %p1236_p7, %p408_p8  ;;  %s1958_s6 = sld [smem:[#allocation21_spill]] }
  0x18   : > { %s1959_s4 = sld [smem:[#allocation20_spill]]  ;;  %s1598_s27 = smov [#allocation5]  }
  0x19   : > { %p1339_p11 = pneg %p1747_p10  ;;  %s444_s17 = sshll.u32 %s1598_s27, 4  ;;  %s445_s17 = int_to_ptr.vmem [resolvable:$true] %s444_s17 }
  0x1a   : > { %s1599_s19 = smov 64   ;;  %s1600_s20 = smov 4  }
  0x1b   : > { %p1761_p12 = pnand %p1353_p9, %p1339_p11  ;;  %s1602_s24 = smov [#allocation7]  }
  0x1c   : > { %s467_s0 = sshll.u32 %s1602_s24, 4  ;;  %s468_s0 = int_to_ptr.vmem [resolvable:$true] %s467_s0 }
  0x1d   : > { %s442_s26 = sshll.u32 %s1958_s6, 4  ;;  %s1601_s6 = smov [#allocation2]   ;;  %s443_s26 = int_to_ptr.hbm [resolvable:$true] %s442_s26 }
  0x1e   : > { %s425_s30 = sshll.u32 %s1959_s4, 4  ;;  %s427_s21 = sshll.u32 %s1601_s6, 4  ;;  %s426_s30 = int_to_ptr.hbm [resolvable:$true] %s425_s30  ;;  %s428_s21 = int_to_ptr.vmem [resolvable:$true] %s427_s21 }
  0x1f   : > { %1345 = dma.hbm_to_vmem [thread:$0]  (!%p1761_p12), %s443_s26, 256, %s445_s17, [#allocation6], %s1599_s19, %s1599_s19, %s1600_s20  }
  0x20   : > { %s465_s4 = sshll.u32 %s1930_s10, 4  ;;  %512 = sbr.rel (%p1747_p10) target bundleno = 2183 (0x887), region = 84  ;;  %s466_s4 = int_to_ptr.hbm [resolvable:$true] %s465_s4 }
  0x21   : > { %1342 = dma.hbm_to_vmem [thread:$0]  (!%p1761_p12), %s426_s30, 256, %s428_s21, [#allocation3], %s1599_s19, %s1599_s19, %s1600_s20  }
  0x22   : > { %1348 = dma.hbm_to_vmem [thread:$0]  (!%p1761_p12), %s466_s4, 256, %s468_s0, [#allocation6], %s1599_s19, %s1599_s19, %s1600_s20  }
  0x25   : > { %1571 = dma.done.wait (%p1353_p9), [#allocation3], 256  }
  0x26   : > { %1573 = vsyncadd (%p1353_p9), [#allocation3], 4294967040 }
  0x27   : > { %1575 = dma.done.wait (%p1353_p9), [#allocation6], 512  }
  0x28   : > { %1577 = vsyncadd (%p1353_p9), [#allocation6], 4294966784  ;;  %p576_p13 = scmp.lt.s32.totalorder %s1719_s25, 1  ;;  %s1961_s24 = sld [smem:[#allocation19_spill]]  ;;  %v1314_v0 = vld [vmem:[%s1922_s2 + $0x8] sm:$0xff]  ;;  %v1313_v2 = vld [vmem:[%s1922_s2] sm:$0xff] }
  0x29   : > { %v1316_v1 = vld [vmem:[#allocation2 + $0x8] sm:$0xff]  ;;  %v1315_v3 = vld [vmem:[#allocation2] sm:$0xff]  ;;  %619 = vmatpush.bf16.msra.mxu0 %v1314_v0  ;;  %vm609_vm0 = vcmask 261120   ;;  %vm664_vm1 = vcmask 64512   ;;  %s1603_s21 = smov 96   ;;  %s1604_s23 = smov 120  }
  0x2a   : > { %s577_s6 = scalar_select %p576_p13, %s1719_s25, 1  ;;  %655 = vmatpush.bf16.msra.mxu1 %v1316_v1  ;;  %v1407_v8 = vld [vmem:[%s1923_s3] ss:$0 sm:$0xff]  ;;  %vm707_vm2 = vcmask 1043456   ;;  %vm917_vm3 = vcmask 130048   ;;  %vm919_vm4 = vcmask 195584  }
  0x2b   : > { %v1408_v9 = vld [vmem:[%s1925_s5] ss:$0 sm:$0xff]  ;;  %s1607_s30 = smov 80   ;;  %s1608_s0 = smov 88   ;;  %vm1066_vm8 = vcmask 523264  }
  0x2c   : > { %s1246_s4 = sshll.u32 %s577_s6, 3  ;;  %s1610_s18 = smov 16  }
  0x2d   : > { %s583_s17 = scalar_lea.vmem %s1921_s1, %s1246_s4  ;;  %620 = vmatpush.bf16.msra.mxu0 %v1313_v2  ;;  %s1611_s26 = smov 8  }
  0x2e   : > { %s579_s27 = scalar_lea.vmem %s1961_s24, %s1246_s4  ;;  %v587_v5 = vld [vmem:[%s583_s17] sm:$0xff]  ;;  %656 = vmatpush.bf16.msra.mxu1 %v1315_v3  ;;  %s1605_s24 = smov 112  }
  0x2f   : > { %v1798_v4 = vld [vmem:[%s579_s27] sm:$0xff]  ;;  %v588_v7 = vpack.c.bf16 %v587_v5, %v587_v5  ;;  %s1606_s27 = smov 104   ;;  %s1609_s17 = smov 72  }
  0x30   : > { %v586_v6 = vpack.c.bf16 %v1798_v4, %v1798_v4  ;;  %s1612_s19 = smov 24   ;;  %s573_s6 = sand.u32 1, %s1588_s22  }
  0x31   : > { %1265 = vmatmul.msk.bf16.vlgmr.msra.gmra.mxu1 %vm609_vm0, %v588_v7  ;;  %s1245_s4 = sshll.u32 %s573_s6, 3  ;;  %s1118_s28 = scalar_lea.sflag [#allocation4], %s573_s6 }
  0x32   : > { %1256 = vmatmul.msk.bf16.vlgmr.msra.gmra.mxu0 %vm609_vm0, %v586_v6 }
  0xae   : > { %v658_v11 = vpop.f32.mrf.mxu1 }
  0xaf   : > { %v622_v10 = vpop.f32.mrf.mxu0  ;;  %v659_v13 = vadd.f32 %v1408_v9, %v658_v11 }
  0xb0   : > { %v623_v12 = vadd.f32 %v1407_v8, %v622_v10 }
  0xb1   : > { %v663_v15 = vpack.c.bf16 %v659_v13, %v659_v13 }
  0xb2   : > { %v662_v14 = vpack.c.bf16 %v623_v12, %v623_v12 }
  0xb3   : > { %v700_v17 = vunpack.c.l.b16 %v663_v15  ;;  %v669_v18 = vsel %vm664_vm1, %v663_v15, 0 }
  0xb4   : > { %v725_v16 = vunpack.c.l.b16 %v662_v14  ;;  %678 = vmatpush.bf16.xpose.msra.mxu2 %v669_v18 }
  0xb5   : > { %v1811_v20 = vpack.c.b16 %v700_v17, %v700_v17 }
  0xb6   : > { %v726_v19 = vpack.c.b16 %v725_v16, %v725_v16  ;;  %v660_v22 = vpop.f32.mrf.mxu1 }
  0xb7   : > { %v624_v21 = vpop.f32.mrf.mxu0  ;;  %702 = vrot.lane.b32.xlu1 %v1811_v20, %s1603_s21  ;;  %s1310_s21 = sshll.u32 %s1719_s25, 3 }
  0xb8   : > { %727 = vrot.lane.b32.xlu2 %v726_v19, %s1604_s23 }
  0xbb   : > { %1266 = vmatmul.msk.bf16.vlgmr.msra.gmra.mxu2 %vm664_vm1, %v662_v14 }
  0xbf   : > { %729 = vrot.lane.b32.xlu1 %v1811_v20, %s1604_s23 }
  0xc0   : > { %788 = vrot.lane.b32.xlu2 %v1811_v20, %s1605_s24 }
  0xc7   : > { %786 = vrot.lane.b32.xlu1 %v726_v19, %s1605_s24 }
  0xc8   : > { %845 = vrot.lane.b32.xlu2 %v726_v19, %s1606_s27 }
 0x112   : > { %v728_v23 = vpop.permute.xlu2 %727 }
 0x11a   : > { %v789_v24 = vpop.permute.xlu2 %788 }
 0x11b   : > { %v794_v25 = vsel %vm664_vm1, %v789_v24, 0 }
 0x11c   : > { %803 = vmatpush.bf16.xpose.msrb.mxu1 %v794_v25 }
 0x122   : > { %v846_v51 = vpop.permute.xlu2 %845 }
 0x129   : > { %v703_v26 = vpop.permute.xlu1 %702 }
 0x12a   : > { %v709_v27 = vsel %vm707_vm2, %v703_v26, 0 }
 0x12b   : > { %718 = vmatpush.bf16.msra.mxu3 %v709_v27 }
 0x131   : > { %v730_v28 = vpop.permute.xlu1 %729 }
 0x132   : > { %v735_v29 = vsel %vm664_vm1, %v730_v28, 0 }
 0x133   : > { %744 = vmatpush.bf16.xpose.msrb.mxu3 %v735_v29 }
 0x139   : > { %v787_v30 = vpop.permute.xlu1 %786 }
 0x13a   : > { %1270 = vmatmul.msk.bf16.vlgmr.msrb.gmra.mxu1 %vm664_vm1, %v787_v30 }
 0x13e   : > { %v680_v31 = vpop.f32.mrf.mxu2 }
 0x13f   : > { %v684_v32 = vsel %vm664_vm1, %v680_v31, -inf }
 0x140   : > { %685 = vmax.xlane.f32.xlu0 %v684_v32 }
 0x146   : > { %v682_v33 = vpop.f32.mrf.mxu2 }
 0x1b3   : > { %v686_v34 = vpop.xlane.xlu0 %685 }
 0x1b4   : > { %v687_v35 = vsub.f32 %v680_v31, %v686_v34 }
 0x1b6   : > { %v688_v36 = vmul.f32 1.442695, %v687_v35 }
 0x1b7   : > { %v805_v37 = vpop.f32.mrf.mxu1 }
 0x1b8   : > { %1416 = vpow2.f32 %v688_v36  ;;  %v809_v38 = vsel %vm664_vm1, %v805_v37, -inf }
 0x1b9   : > { %810 = vmax.xlane.f32.xlu2 %v809_v38 }
 0x1be   : > { %v1417_v39 = vpop.eup %1416 }
 0x1bf   : > { %v807_v40 = vpop.f32.mrf.mxu1  ;;  %v690_v41 = vsel %vm664_vm1, %v1417_v39, 0.0 }
 0x1c0   : > { %691 = vadd.xlane.f32.xlu0 %v690_v41 }
 0x1d4   : > { %847 = vrot.lane.b32.xlu0 %v1811_v20, %s1606_s27 }
 0x22c   : > { %v811_v53 = vpop.xlane.xlu2 %810 }
 0x22d   : > { %v812_v54 = vsub.f32 %v805_v37, %v811_v53 }
 0x22f   : > { %v813_v56 = vmul.f32 1.442695, %v812_v54 }
 0x233   : > { %v692_v42 = vpop.xlane.xlu0 %691 }
 0x234   : > { %1418 = vrcp.f32 %v692_v42 }
 0x235   : > { %1420 = vpow2.f32 %v813_v56 }
 0x23a   : > { %v1419_v43 = vpop.eup %1418 }
 0x23b   : > { %v694_v44 = vmul.f32 %v1419_v43, %v692_v42  ;;  %v1421_v59 = vpop.eup %1420 }
 0x23c   : > { %v815_v61 = vsel %vm664_vm1, %v1421_v59, 0.0 }
 0x23d   : > { %v695_v45 = vsub.f32 2.0, %v694_v44 }
 0x23f   : > { %v696_v46 = vmul.f32 %v1419_v43, %v695_v45  ;;  %v1318_v45 = vld [vmem:[#allocation5 + $0x8] sm:$0xff] }
 0x240   : > { %951 = vmatpush.bf16.msra.mxu1 %v1318_v45 }
 0x241   : > { %v697_v47 = vmul.f32 %v1417_v39, %v696_v46  ;;  %v1317_v46 = vld [vmem:[#allocation5] sm:$0xff] }
 0x243   : > { %v698_v48 = vpack.c.bf16 %v697_v47, %v697_v47 }
 0x244   : > { %952 = vmatpush.bf16.msra.mxu1 %v1317_v46 }
 0x245   : > { %1267 = vmatmul.msk.bf16.vlgmr.msra.gmra.mxu3 %vm664_vm1, %v698_v48 }
 0x246   : > { %v848_v49 = vpop.permute.xlu0 %847 }
 0x247   : > { %v853_v50 = vsel %vm664_vm1, %v848_v49, 0 }
 0x248   : > { %862 = vmatpush.bf16.xpose.msra.mxu3 %v853_v50 }
 0x255   : > { %1268 = vmatmul.msk.bf16.vlgmr.msrb.gmra.mxu3 %vm664_vm1, %v728_v23 }
 0x265   : > { %1272 = vmatmul.msk.bf16.vlgmr.msra.gmra.mxu3 %vm664_vm1, %v846_v51 }
 0x2c8   : > { %v1829_v52 = vpop.f32.mrf.mxu3 }
 0x2d0   : > { %v722_v55 = vpop.f32.mrf.mxu3 }
 0x2d1   : > { %v1409_v55 = vld [vmem:[%s1927_s7] ss:$0 sm:$0xff] }
 0x2d8   : > { %v746_v57 = vpop.f32.mrf.mxu3 }
 0x2d9   : > { %v750_v58 = vsel %vm664_vm1, %v746_v57, -inf }
 0x2da   : > { %751 = vmax.xlane.f32.xlu1 %v750_v58 }
 0x2e0   : > { %v748_v60 = vpop.f32.mrf.mxu3 }
 0x2e2   : > { %816 = vadd.xlane.f32.xlu1 %v815_v61 }
 0x2e8   : > { %v864_v62 = vpop.f32.mrf.mxu3 }
 0x2e9   : > { %v868_v63 = vsel %vm664_vm1, %v864_v62, -inf }
 0x2ea   : > { %869 = vmax.xlane.f32.xlu0 %v868_v63 }
 0x2f0   : > { %v866_v0 = vpop.f32.mrf.mxu3 }
 0x2fe   : > { %824 = vrot.lane.b32.xlu0 %v1811_v20, %s1607_s30 }
 0x34d   : > { %v752_v1 = vpop.xlane.xlu1 %751 }
 0x34e   : > { %v753_v2 = vsub.f32 %v746_v57, %v752_v1  ;;  %v1320_v1 = vld [vmem:[#allocation7 + $0x8] sm:$0xff] }
 0x350   : > { %v754_v3 = vmul.f32 1.442695, %v753_v2  ;;  %v1319_v2 = vld [vmem:[#allocation7] sm:$0xff] }
 0x352   : > { %1422 = vpow2.f32 %v754_v3  ;;  %v1324_v3 = vld [vmem:[%s1932_s12 + $0x18] sm:$0xff] }
 0x353   : > { %1074 = vmatpush.bf16.msrb.mxu3 %v1324_v3 }
 0x355   : > { %v817_v5 = vpop.xlane.xlu1 %816 }
 0x356   : > { %1424 = vrcp.f32 %v817_v5 }
 0x358   : > { %v1423_v6 = vpop.eup %1422 }
 0x359   : > { %v756_v7 = vsel %vm664_vm1, %v1423_v6, 0.0 }
 0x35a   : > { %757 = vadd.xlane.f32.xlu2 %v756_v7 }
 0x35c   : > { %v1425_v10 = vpop.eup %1424 }
 0x35d   : > { %v870_v8 = vpop.xlane.xlu0 %869  ;;  %v819_v12 = vmul.f32 %v1425_v10, %v817_v5 }
 0x35e   : > { %v871_v9 = vsub.f32 %v864_v62, %v870_v8 }
 0x35f   : > { %v820_v13 = vsub.f32 2.0, %v819_v12 }
 0x360   : > { %v872_v11 = vmul.f32 1.442695, %v871_v9 }
 0x361   : > { %v821_v16 = vmul.f32 %v1425_v10, %v820_v13 }
 0x362   : > { %1426 = vpow2.f32 %v872_v11 }
 0x363   : > { %v822_v17 = vmul.f32 %v1421_v59, %v821_v16  ;;  %v1411_v16 = vld [vmem:[%s1929_s9] ss:$0 sm:$0xff] }
 0x365   : > { %v823_v21 = vpack.c.bf16 %v822_v17, %v822_v17 }
 0x368   : > { %v1427_v14 = vpop.eup %1426 }
 0x369   : > { %v874_v15 = vsel %vm664_vm1, %v1427_v14, 0.0 }
 0x36a   : > { %875 = vadd.xlane.f32.xlu1 %v874_v15 }
 0x370   : > { %v825_v18 = vpop.permute.xlu0 %824 }
 0x371   : > { %v830_v19 = vsel %vm707_vm2, %v825_v18, 0 }
 0x372   : > { %765 = vrot.lane.b32.xlu2 %v1811_v20, %s1608_s0  ;;  %839 = vmatpush.bf16.msrb.mxu2 %v830_v19  ;;  %s1128_s0 = scalar_lea.hbm %s1936_s16, %s1310_s21 }
 0x373   : > { %s1132_s20 = sshll.u32 %s1128_s0, 4  ;;  %s1133_s20 = int_to_ptr.hbm [resolvable:$true] %s1132_s20 }
 0x374   : > { %s1540_s29 = sshra.s32 %s1133_s20, 4  ;;  %s1541_s29 = int_to_ptr.hbm [resolvable:$true] %s1540_s29 }
 0x375   : > { %1271 = vmatmul.msk.bf16.vlgmr.msrb.gmra.mxu2 %vm664_vm1, %v823_v21  ;;  %s1542_s21 = scalar_lea.hbm %s1541_s29, 8  ;;  %p1547_p3 = scmp.lt.s32.totalorder %s1541_s29, %s1936_s16 }
 0x376   : > { %1021 = vmatpush.bf16.msra.mxu2 %v1320_v1  ;;  %p1543_p0 = scmp.ne.s32.totalorder %s1541_s29, %s1542_s21 }
 0x378   : > { %p1544_p1 = pnand %p1543_p0, %p1736_p5 }
 0x37a   : > { %1022 = vmatpush.bf16.msra.mxu2 %v1319_v2  ;;  %p1545_p2 = pneg %p1544_p1 }
 0x383   : > { %883 = vrot.lane.b32.xlu1 %v1811_v20, %s1609_s17 }
 0x3cd   : > { %v758_v22 = vpop.xlane.xlu2 %757 }
 0x3ce   : > { %1428 = vrcp.f32 %v758_v22 }
 0x3d4   : > { %v1429_v23 = vpop.eup %1428 }
 0x3d5   : > { %v760_v24 = vmul.f32 %v1429_v23, %v758_v22  ;;  %v766_v25 = vpop.permute.xlu2 %765  ;;  %v1322_v22 = vld [vmem:[%s1932_s12 + $0x8] sm:$0xff] }
 0x3d6   : > { %v771_v26 = vsel %vm707_vm2, %v766_v25, 0 }
 0x3d7   : > { %v761_v27 = vsub.f32 2.0, %v760_v24  ;;  %780 = vmatpush.bf16.msrb.mxu0 %v771_v26  ;;  %v1412_v24 = vld [vmem:[%s1931_s11] ss:$0 sm:$0xff] }
 0x3d9   : > { %v762_v28 = vmul.f32 %v1429_v23, %v761_v27  ;;  %v1321_v23 = vld [vmem:[%s1932_s12] sm:$0xff] }
 0x3db   : > { %v763_v29 = vmul.f32 %v1423_v6, %v762_v28  ;;  %v1323_v6 = vld [vmem:[%s1932_s12 + $0x10] sm:$0xff] }
 0x3dc   : > { %1075 = vmatpush.bf16.msrb.mxu3 %v1323_v6 }
 0x3dd   : > { %v764_v30 = vpack.c.bf16 %v763_v29, %v763_v29  ;;  %v876_v31 = vpop.xlane.xlu1 %875 }
 0x3de   : > { %1430 = vrcp.f32 %v876_v31 }
 0x3df   : > { %1269 = vmatmul.msk.bf16.vlgmr.msrb.gmra.mxu0 %vm664_vm1, %v764_v30  ;;  %v1413_v30 = vld [vmem:[%s1933_s13] ss:$0 sm:$0xff] }
 0x3e0   : > { %1076 = vmatpush.bf16.msrb.mxu3 %v1322_v22 }
 0x3e4   : > { %v1431_v32 = vpop.eup %1430  ;;  %1077 = vmatpush.bf16.msrb.mxu3 %v1321_v23 }
 0x3e5   : > { %v878_v33 = vmul.f32 %v1431_v32, %v876_v31 }
 0x3e7   : > { %v879_v34 = vsub.f32 2.0, %v878_v33 }
 0x3e9   : > { %v880_v20 = vmul.f32 %v1431_v32, %v879_v34 }
 0x3eb   : > { %v881_v35 = vmul.f32 %v1427_v14, %v880_v20  ;;  %v1410_v14 = vld [vmem:[%s1928_s8] ss:$0 sm:$0xff] }
 0x3ed   : > { %v882_v38 = vpack.c.bf16 %v881_v35, %v881_v35 }
 0x3f5   : > { %v884_v36 = vpop.permute.xlu1 %883 }
 0x3f6   : > { %v889_v37 = vsel %vm707_vm2, %v884_v36, 0 }
 0x3f7   : > { %898 = vmatpush.bf16.msra.mxu0 %v889_v37 }
 0x3f8   : > { %v841_v39 = vpop.f32.mrf.mxu2 }
 0x3f9   : > { %909 = vrot.lane.b32.xlu0 %v841_v39, %s1610_s18 }
 0x3fa   : > { %1273 = vmatmul.msk.bf16.vlgmr.msra.gmra.mxu0 %vm664_vm1, %v882_v38 }
 0x400   : > { %v843_v40 = vpop.f32.mrf.mxu2 }
 0x45c   : > { %v782_v41 = vpop.f32.mrf.mxu0 }
 0x45d   : > { %905 = vrot.lane.b32.xlu2 %v782_v41, %s1611_s26 }
 0x464   : > { %v784_v42 = vpop.f32.mrf.mxu0 }
 0x46b   : > { %v910_v49 = vpop.permute.xlu0 %909 }
 0x477   : > { %v900_v43 = vpop.f32.mrf.mxu0 }
 0x478   : > { %913 = vrot.lane.b32.xlu2 %v900_v43, %s1612_s19  ;;  %s575_s19 = scalar_lea.vmem [#allocation8], %s1245_s4  ;;  %s1546_s4 = scalar_lea.hbm %s1936_s16, 16 }
 0x479   : > { %s1130_s25 = sshll.u32 %s575_s19, 4  ;;  %p1548_p4 = scmp.lt.s32.totalorder %s1546_s4, %s1542_s21  ;;  %s1131_s25 = int_to_ptr.vmem [resolvable:$true] %s1130_s25 }
 0x47b   : > { %p1549_p7 = por %p1548_p4, %p1547_p3 }
 0x47d   : > { %p1550_p8 = pnand %p1549_p7, %p1545_p2 }
 0x47f   : > { %v902_v44 = vpop.f32.mrf.mxu0 }
 0x4b7   : > { %v906_v47 = vpop.permute.xlu2 %905 }
 0x4b8   : > { %v916_v48 = vsel %vm664_vm1, %v1829_v52, %v906_v47 }
 0x4b9   : > { %v918_v51 = vsel %vm917_vm3, %v916_v48, %v910_v49  ;;  %v1414_v49 = vld [vmem:[%s1934_s14] ss:$0 sm:$0xff] }
 0x4d2   : > { %v914_v50 = vpop.permute.xlu2 %913 }
 0x4d3   : > { %v920_v53 = vsel %vm919_vm4, %v918_v51, %v914_v50  ;;  %v1415_v51 = vld [vmem:[%s1935_s15] ss:$0 sm:$0xff] }
 0x4d4   : > { %v921_v54 = vpack.c.bf16 %v920_v53, %v920_v53 }
 0x4d6   : > { %1282 = vmatmul.msk.bf16.vlgmr.msra.gmra.mxu1 %vm609_vm0, %v921_v54 }
 0x553   : > { %v954_v56 = vpop.f32.mrf.mxu1 }
 0x554   : > { %v955_v57 = vadd.f32 %v1409_v55, %v954_v56 }
 0x556   : > { %v958_v58 = vadd.f32 %v955_v57, %v1798_v4 }
 0x558   : > { %v959_v59 = vsel %vm609_vm0, %v958_v58, 0.0 }
 0x559   : > { %960 = vadd.xlane.f32.xlu0 %v959_v59 }
 0x55b   : > { %v956_v52 = vpop.f32.mrf.mxu1 }
 0x5cc   : > { %v961_v60 = vpop.xlane.xlu0 %960 }
 0x5cd   : > { %v962_v61 = vmul.f32 0.03125, %v961_v60 }
 0x5cf   : > { %v963_v62 = vsub.f32 %v958_v58, %v962_v61 }
 0x5d1   : > { %v964_v63 = vmul.f32 %v963_v62, %v963_v62 }
 0x5d3   : > { %v965_v0 = vsel %vm609_vm0, %v964_v63, 0.0 }
 0x5d4   : > { %966 = vadd.xlane.f32.xlu1 %v965_v0 }
 0x647   : > { %v967_v4 = vpop.xlane.xlu1 %966 }
 0x648   : > { %v968_v5 = vmul.f32 0.03125, %v967_v4 }
 0x64a   : > { %v969_v7 = vadd.f32 1e-05, %v968_v5 }
 0x64c   : > { %1432 = vrsqrt.f32 %v969_v7  ;;  %vm976_vm6 = vweird.f32 %v969_v7 }
 0x652   : > { %v1433_v8 = vpop.eup %1432 }
 0x653   : > { %v971_v9 = vmul.f32 %v1433_v8, %v969_v7  ;;  %vm977_vm5 = vweird.f32 %v1433_v8 }
 0x654   : > { %vm978_vm7 = vmor %vm976_vm6, %vm977_vm5 }
 0x655   : > { %v972_v10 = vmul.f32 %v1433_v8, %v971_v9 }
 0x657   : > { %v973_v11 = vmul.f32 0.5, %v972_v10 }
 0x659   : > { %v974_v12 = vsub.f32 1.5, %v973_v11 }
 0x65b   : > { %v975_v13 = vmul.f32 %v1433_v8, %v974_v12 }
 0x65d   : > { %v979_v15 = vsel %vm978_vm7, %v1433_v8, %v975_v13 }
 0x65e   : > { %v980_v17 = vmul.f32 %v979_v15, %v963_v62 }
 0x660   : > { %v985_v18 = vmul.f32 %v1410_v14, %v980_v17 }
 0x662   : > { %v990_v19 = vadd.f32 %v1411_v16, %v985_v18 }
 0x664   : > { %v991_v21 = vpack.c.bf16 %v990_v19, %v990_v19 }
 0x666   : > { %1291 = vmatmul.msk.bf16.vlgmr.msra.gmra.mxu2 %vm609_vm0, %v991_v21 }
 0x6e9   : > { %v1024_v25 = vpop.f32.mrf.mxu2 }
 0x6ea   : > { %v1025_v26 = vadd.f32 %v1412_v24, %v1024_v25 }
 0x6ec   : > { %v1028_v27 = vmax.f32 %v1025_v26, 0.0 }
 0x6ee   : > { %v1029_v28 = vpack.c.bf16 %v1028_v27, %v1028_v27 }
 0x6f0   : > { %1308 = vmatmul.msk.bf16.vlgmr.msrb.gmra.mxu3 %vm1066_vm8, %v1029_v28 }
 0x6f1   : > { %v1026_v29 = vpop.f32.mrf.mxu2 }
 0x773   : > { %v1079_v31 = vpop.f32.mrf.mxu3 }
 0x774   : > { %v1080_v32 = vadd.f32 %v1413_v30, %v1079_v31 }
 0x776   : > { %v1083_v33 = vadd.f32 %v1080_v32, %v990_v19 }
 0x778   : > { %v1084_v34 = vsel %vm609_vm0, %v1083_v33, 0.0 }
 0x779   : > { %1085 = vadd.xlane.f32.xlu2 %v1084_v34 }
 0x77b   : > { %v1081_v20 = vpop.f32.mrf.mxu3 }
 0x7ec   : > { %v1086_v35 = vpop.xlane.xlu2 %1085 }
 0x7ed   : > { %v1087_v36 = vmul.f32 0.03125, %v1086_v35 }
 0x7ef   : > { %v1088_v37 = vsub.f32 %v1083_v33, %v1087_v36 }
 0x7f1   : > { %v1089_v38 = vmul.f32 %v1088_v37, %v1088_v37 }
 0x7f3   : > { %v1090_v39 = vsel %vm609_vm0, %v1089_v38, 0.0 }
 0x7f4   : > { %1091 = vadd.xlane.f32.xlu0 %v1090_v39 }
 0x867   : > { %v1092_v40 = vpop.xlane.xlu0 %1091 }
 0x868   : > { %v1093_v41 = vmul.f32 0.03125, %v1092_v40 }
 0x86a   : > { %v1094_v42 = vadd.f32 1e-05, %v1093_v41 }
 0x86c   : > { %1434 = vrsqrt.f32 %v1094_v42  ;;  %vm1101_vm10 = vweird.f32 %v1094_v42 }
 0x872   : > { %v1435_v43 = vpop.eup %1434 }
 0x873   : > { %v1096_v44 = vmul.f32 %v1435_v43, %v1094_v42  ;;  %vm1102_vm9 = vweird.f32 %v1435_v43 }
 0x874   : > { %vm1103_vm11 = vmor %vm1101_vm10, %vm1102_vm9 }
 0x875   : > { %v1097_v45 = vmul.f32 %v1435_v43, %v1096_v44 }
 0x877   : > { %v1098_v46 = vmul.f32 0.5, %v1097_v45 }
 0x879   : > { %v1099_v47 = vsub.f32 1.5, %v1098_v46 }
 0x87b   : > { %v1100_v48 = vmul.f32 %v1435_v43, %v1099_v47 }
 0x87d   : > { %v1104_v50 = vsel %vm1103_vm11, %v1435_v43, %v1100_v48 }
 0x87e   : > { %v1105_v53 = vmul.f32 %v1104_v50, %v1088_v37 }
 0x880   : > { %v1110_v54 = vmul.f32 %v1414_v49, %v1105_v53 }
 0x882   : > { %v1115_v55 = vadd.f32 %v1415_v51, %v1110_v54 }
 0x884   : > { %1116 = vst.msk [vmem:[%s575_s19] sm:$0xff] %vm609_vm0, %v1115_v55 }
 0x885   : > { %1553 = shalt.err (!%p1550_p8)
}
 0x886   : > { %1337 = dma.vmem_to_hbm [thread:$0]  (%p1736_p5), %s1131_s25, 128, %s1133_s20, %s1118_s28  }
 0x887 PF: > { %s1963_s6 = sld [smem:[#allocation14_spill]] }
 0x888   : > { %s1964_s0 = sld [smem:[#allocation12_spill]] }
 0x88d   : > { %p1359_p9 = scmp.ge.s32.totalorder %s1963_s6, 2 }
 0x88e   : > { %s1144_s18 = sand.u32 1, %s1964_s0  }
 0x88f   : > { %p1350_p10 = pnand %p1359_p9, %p1740_p6  ;;  %s1145_s19 = scalar_lea.sflag [#allocation4], %s1144_s18 }
 0x891   : > { %p1351_p11 = pneg %p1350_p10 }
 0x893   : > { %1579 = dma.done.wait (%p1351_p11), %s1145_s19, 128  }
 0x894   : > { %1581 = vsyncadd (%p1351_p11), %s1145_s19, 4294967168  ;;  %s1966_s24 = sld [smem:[#allocation15_spill]]  ;;  %s1969_s21 = smov %s1588_s22 }
 0x895   : > { %s1967_s29 = sld [smem:[#allocation13_spill]] }
 0x896   : > { %s1968_s23 = sld [smem:[#allocation16_spill]] }
 0x89a   : > { %p28_p12 = scmp.ge.s32.totalorder %s1966_s24, 4  }
 0x89b   : > { %s1970_s22 = smov %s1967_s29 }
 0x89c   :  { %30 = sbr.rel (!%p28_p12) target bundleno = 9 (0x9), region = 135 }
 0x8a1   :  { %1151 = vsyncpa [#allocation3], 1 }
 0x8a2   :  { %1153 = vsyncpa [#allocation3 + $0x1], 1 }
 0x8a3   :  { %1154 = vsyncpa [#allocation6], 1 }
 0x8a4   :  { %1155 = vsyncpa [#allocation4], 1 }
 0x8a5   :  { %1157 = vsyncpa [#allocation4 + $0x1], 1 }

// kernel: tpu_custom_call.1
= control target key start
LH: loop header
LB: loop body
LE: loop exit
PB: predicated region body
PF: predicated region fallthrough
CT: control target
= control target key end

     0   :  { %s1920_s0 = inlined_call_operand.vmem [shape: f32[2,8,32], index: 0, kind: input, shape index: {}]   ;;  %s1921_s1 = inlined_call_operand.vmem [shape: f32[2,8,32], index: 1, kind: input, shape index: {}]   ;;  %s1922_s2 = inlined_call_operand.vmem [shape: bf16[32,32], index: 2, kind: input, shape index: {}]   ;;  %s1923_s3 = inlined_call_operand.vmem [shape: f32[1,32], index: 3, kind: input, shape index: {}]   ;;  %s1924_s4 = inlined_call_operand.hbm [shape: bf16[32,64], index: 4, kind: input, shape index: {}]   ;;  %s1925_s5 = inlined_call_operand.vmem [shape: f32[1,64], index: 5, kind: input, shape index: {}]   ;;  %s1926_s6 = inlined_call_operand.hbm [shape: bf16[32,32], index: 6, kind: input, shape index: {}]   ;;  %s1927_s7 = inlined_call_operand.vmem [shape: f32[1,32], index: 7, kind: input, shape index: {}]   ;;  %s1928_s8 = inlined_call_operand.vmem [shape: f32[1,32], index: 8, kind: input, shape index: {}]   ;;  %s1929_s9 = inlined_call_operand.vmem [shape: f32[1,32], index: 9, kind: input, shape index: {}]   ;;  %s1930_s10 = inlined_call_operand.hbm [shape: bf16[32,64], index: 10, kind: input, shape index: {}]   ;;  %s1931_s11 = inlined_call_operand.vmem [shape: f32[1,64], index: 11, kind: input, shape index: {}]   ;;  %s1932_s12 = inlined_call_operand.vmem [shape: bf16[64,32], index: 12, kind: input, shape index: {}]   ;;  %s1933_s13 = inlined_call_operand.vmem [shape: f32[1,32], index: 13, kind: input, shape index: {}]   ;;  %s1934_s14 = inlined_call_operand.vmem [shape: f32[1,32], index: 14, kind: input, shape index: {}]   ;;  %s1935_s15 = inlined_call_operand.vmem [shape: f32[1,32], index: 15, kind: input, shape index: {}]   ;;  %s1936_s16 = inlined_call_operand.hbm [shape: f32[2,8,32], index: 16, kind: output, shape index: {}]  }
   0x1   :  { %1945 = sst [smem:[#allocation19_spill]] %s1920_s0 }
   0x2   :  { %1946 = sst [smem:[#allocation20_spill]] %s1924_s4 }
   0x3   :  { %1947 = sst [smem:[#allocation21_spill]] %s1926_s6 }
   0x4   :  { %21 = vsyncpa [#allocation3], 0 }
   0x5   :  { %22 = vsyncpa [#allocation6], 0 }
   0x6   :  { %23 = vsyncpa [#allocation4], 0 }
   0x7   :  { %25 = vsyncpa [#allocation4 + $0x1], 0  ;;  %s1698_s21 = smov 0   ;;  %s1700_s22 = smov 0  }
   0x8   :  { %s1702_s23 = smov 0   ;;  %s1704_s24 = smov 0  }
   0x9 LB: > { %1948 = sst [smem:[#allocation12_spill]] %s1584_s21  ;;  %s1719_s25 = sadd.s32 4294967295, %s1596_s24   ;;  %s1596_s24 = sphi %s1704_s24, %s1966_s24   ;;  %s1592_s23 = sphi %s1702_s23, %s1968_s23   ;;  %s1588_s22 = sphi %s1700_s22, %s1970_s22   ;;  %s1584_s21 = sphi %s1698_s21, %s1969_s21  }
   0xa   : > { %1949 = sst [smem:[#allocation13_spill]] %s1592_s23  ;;  %s1235_s26 = sadd.s32 4294967294, %s1596_s24  }
   0xb   : > { %1950 = sst [smem:[#allocation14_spill]] %s1596_s24  ;;  %s1723_s27 = sadd.s32 1, %s1596_s24  }
   0xc   : > { %1951 = sst [smem:[#allocation15_spill]] %s1723_s27  ;;  %s384_s28 = sadd.s32 1, %s1592_s23 }
   0xd   : > { %s381_s29 = ssub.s32 %s1596_s24, %s1723_s27  ;;  %p394_p0 = scmp.ne.s32.totalorder %s1592_s23, %s1588_s22 }
   0xe   : > { %p382_p1 = scmp.eq.s32.totalorder %s381_s29, 0  ;;  %p395_p2 = scmp.eq.s32.totalorder %s1719_s25, 1 }
   0xf   : > { %p400_p3 = scmp.ne.s32.totalorder %s1588_s22, %s1584_s21  ;;  %p401_p4 = scmp.eq.s32.totalorder %s1235_s26, 1 }
  0x10   : > { %s1734_s30 = scalar_select %p382_p1, %s1592_s23, %s384_s28  }
  0x11   : > { %p1736_p5 = por %p395_p2, %p394_p0  ;;  %p1740_p6 = por %p401_p4, %p400_p3 }
  0x12   : > { %1952 = sst [smem:[#allocation16_spill]] %s1734_s30  ;;  %p1236_p7 = scmp.ge.s32.totalorder %s1596_s24, 1 }
  0x13   : > { %s1953_s0 = scalar_select %p1736_p5, 1, 0 }
  0x14   : > { %s1955_s17 = scalar_select %p1740_p6, 1, 0 }
  0x15   : > { %1954 = sst [smem:[#allocation17_spill]] %s1953_s0  ;;  %p408_p8 = scmp.lt.s32.totalorder %s1596_s24, 3 }
  0x16   : > { %1956 = sst [smem:[#allocation18_spill]] %s1955_s17  ;;  %p1353_p9 = scmp.eq.s32.totalorder %s1719_s25, 0 }
  0x17   : > { %p1747_p10 = pnand %p1236_p7, %p408_p8  ;;  %s1958_s6 = sld [smem:[#allocation21_spill]] }
  0x18   : > { %s1959_s4 = sld [smem:[#allocation20_spill]]  ;;  %s1598_s27 = smov [#allocation5]  }
  0x19   : > { %p1339_p11 = pneg %p1747_p10  ;;  %s444_s17 = sshll.u32 %s1598_s27, 4  ;;  %s445_s17 = int_to_ptr.vmem [resolvable:$true] %s444_s17 }
  0x1a   : > { %s1599_s19 = smov 64   ;;  %s1600_s20 = smov 4  }
  0x1b   : > { %p1761_p12 = pnand %p1353_p9, %p1339_p11  ;;  %s1602_s24 = smov [#allocation7]  }
  0x1c   : > { %s467_s0 = sshll.u32 %s1602_s24, 4  ;;  %s468_s0 = int_to_ptr.vmem [resolvable:$true] %s467_s0 }
  0x1d   : > { %s442_s26 = sshll.u32 %s1958_s6, 4  ;;  %s1601_s6 = smov [#allocation2]   ;;  %s443_s26 = int_to_ptr.hbm [resolvable:$true] %s442_s26 }
  0x1e   : > { %s425_s30 = sshll.u32 %s1959_s4, 4  ;;  %s427_s21 = sshll.u32 %s1601_s6, 4  ;;  %s426_s30 = int_to_ptr.hbm [resolvable:$true] %s425_s30  ;;  %s428_s21 = int_to_ptr.vmem [resolvable:$true] %s427_s21 }
  0x1f   : > { %1345 = dma.hbm_to_vmem [thread:$0]  (!%p1761_p12), %s443_s26, 256, %s445_s17, [#allocation6], %s1599_s19, %s1599_s19, %s1600_s20  }
  0x20   : > { %s465_s4 = sshll.u32 %s1930_s10, 4  ;;  %512 = sbr.rel (%p1747_p10) target bundleno = 2183 (0x887), region = 84  ;;  %s466_s4 = int_to_ptr.hbm [resolvable:$true] %s465_s4 }
  0x21   : > { %1342 = dma.hbm_to_vmem [thread:$0]  (!%p1761_p12), %s426_s30, 256, %s428_s21, [#allocation3], %s1599_s19, %s1599_s19, %s1600_s20  }
  0x22   : > { %1348 = dma.hbm_to_vmem [thread:$0]  (!%p1761_p12), %s466_s4, 256, %s468_s0, [#allocation6], %s1599_s19, %s1599_s19, %s1600_s20  }
  0x25   : > { %1571 = dma.done.wait (%p1353_p9), [#allocation3], 256  }
  0x26   : > { %1573 = vsyncadd (%p1353_p9), [#allocation3], 4294967040 }
  0x27   : > { %1575 = dma.done.wait (%p1353_p9), [#allocation6], 512  }
  0x28   : > { %1577 = vsyncadd (%p1353_p9), [#allocation6], 4294966784  ;;  %p576_p13 = scmp.lt.s32.totalorder %s1719_s25, 1  ;;  %s1961_s24 = sld [smem:[#allocation19_spill]]  ;;  %v1314_v0 = vld [vmem:[%s1922_s2 + $0x8] sm:$0xff]  ;;  %v1313_v2 = vld [vmem:[%s1922_s2] sm:$0xff] }
  0x29   : > { %v1316_v1 = vld [vmem:[#allocation2 + $0x8] sm:$0xff]  ;;  %v1315_v3 = vld [vmem:[#allocation2] sm:$0xff]  ;;  %619 = vmatpush.bf16.msra.mxu0 %v1314_v0  ;;  %vm609_vm0 = vcmask 261120   ;;  %vm664_vm1 = vcmask 64512   ;;  %s1603_s21 = smov 96   ;;  %s1604_s23 = smov 120  }
  0x2a   : > { %s577_s6 = scalar_select %p576_p13, %s1719_s25, 1  ;;  %655 = vmatpush.bf16.msra.mxu1 %v1316_v1  ;;  %v1407_v8 = vld [vmem:[%s1923_s3] ss:$0 sm:$0xff]  ;;  %vm707_vm2 = vcmask 1043456   ;;  %vm917_vm3 = vcmask 130048   ;;  %vm919_vm4 = vcmask 195584  }
  0x2b   : > { %v1408_v9 = vld [vmem:[%s1925_s5] ss:$0 sm:$0xff]  ;;  %s1607_s30 = smov 80   ;;  %s1608_s0 = smov 88   ;;  %vm1066_vm8 = vcmask 523264  }
  0x2c   : > { %s1246_s4 = sshll.u32 %s577_s6, 3  ;;  %s1610_s18 = smov 16  }
  0x2d   : > { %s583_s17 = scalar_lea.vmem %s1921_s1, %s1246_s4  ;;  %620 = vmatpush.bf16.msra.mxu0 %v1313_v2  ;;  %s1611_s26 = smov 8  }
  0x2e   : > { %s579_s27 = scalar_lea.vmem %s1961_s24, %s1246_s4  ;;  %v587_v5 = vld [vmem:[%s583_s17] sm:$0xff]  ;;  %656 = vmatpush.bf16.msra.mxu1 %v1315_v3  ;;  %s1605_s24 = smov 112  }
  0x2f   : > { %v1798_v4 = vld [vmem:[%s579_s27] sm:$0xff]  ;;  %v588_v7 = vpack.c.bf16 %v587_v5, %v587_v5  ;;  %s1606_s27 = smov 104   ;;  %s1609_s17 = smov 72  }
  0x30   : > { %v586_v6 = vpack.c.bf16 %v1798_v4, %v1798_v4  ;;  %s1612_s19 = smov 24   ;;  %s573_s6 = sand.u32 1, %s1588_s22  }
  0x31   : > { %1265 = vmatmul.msk.bf16.vlgmr.msra.gmra.mxu1 %vm609_vm0, %v588_v7  ;;  %s1245_s4 = sshll.u32 %s573_s6, 3  ;;  %s1118_s28 = scalar_lea.sflag [#allocation4], %s573_s6 }
  0x32   : > { %1256 = vmatmul.msk.bf16.vlgmr.msra.gmra.mxu0 %vm609_vm0, %v586_v6 }
  0xae   : > { %v658_v11 = vpop.f32.mrf.mxu1 }
  0xaf   : > { %v622_v10 = vpop.f32.mrf.mxu0  ;;  %v659_v13 = vadd.f32 %v1408_v9, %v658_v11 }
  0xb0   : > { %v623_v12 = vadd.f32 %v1407_v8, %v622_v10 }
  0xb1   : > { %v663_v15 = vpack.c.bf16 %v659_v13, %v659_v13 }
  0xb2   : > { %v662_v14 = vpack.c.bf16 %v623_v12, %v623_v12 }
  0xb3   : > { %v700_v17 = vunpack.c.l.b16 %v663_v15  ;;  %v669_v18 = vsel %vm664_vm1, %v663_v15, 0 }
  0xb4   : > { %v725_v16 = vunpack.c.l.b16 %v662_v14  ;;  %678 = vmatpush.bf16.xpose.msra.mxu2 %v669_v18 }
  0xb5   : > { %v1811_v20 = vpack.c.b16 %v700_v17, %v700_v17 }
  0xb6   : > { %v726_v19 = vpack.c.b16 %v725_v16, %v725_v16  ;;  %v660_v22 = vpop.f32.mrf.mxu1 }
  0xb7   : > { %v624_v21 = vpop.f32.mrf.mxu0  ;;  %702 = vrot.lane.b32.xlu1 %v1811_v20, %s1603_s21  ;;  %s1310_s21 = sshll.u32 %s1719_s25, 3 }
  0xb8   : > { %727 = vrot.lane.b32.xlu2 %v726_v19, %s1604_s23 }
  0xbb   : > { %1266 = vmatmul.msk.bf16.vlgmr.msra.gmra.mxu2 %vm664_vm1, %v662_v14 }
  0xbf   : > { %729 = vrot.lane.b32.xlu1 %v1811_v20, %s1604_s23 }
  0xc0   : > { %788 = vrot.lane.b32.xlu2 %v1811_v20, %s1605_s24 }
  0xc7   : > { %786 = vrot.lane.b32.xlu1 %v726_v19, %s1605_s24 }
  0xc8   : > { %845 = vrot.lane.b32.xlu2 %v726_v19, %s1606_s27 }
 0x112   : > { %v728_v23 = vpop.permute.xlu2 %727 }
 0x11a   : > { %v789_v24 = vpop.permute.xlu2 %788 }
 0x11b   : > { %v794_v25 = vsel %vm664_vm1, %v789_v24, 0 }
 0x11c   : > { %803 = vmatpush.bf16.xpose.msrb.mxu1 %v794_v25 }
 0x122   : > { %v846_v51 = vpop.permute.xlu2 %845 }
 0x129   : > { %v703_v26 = vpop.permute.xlu1 %702 }
 0x12a   : > { %v709_v27 = vsel %vm707_vm2, %v703_v26, 0 }
 0x12b   : > { %718 = vmatpush.bf16.msra.mxu3 %v709_v27 }
 0x131   : > { %v730_v28 = vpop.permute.xlu1 %729 }
 0x132   : > { %v735_v29 = vsel %vm664_vm1, %v730_v28, 0 }
 0x133   : > { %744 = vmatpush.bf16.xpose.msrb.mxu3 %v735_v29 }
 0x139   : > { %v787_v30 = vpop.permute.xlu1 %786 }
 0x13a   : > { %1270 = vmatmul.msk.bf16.vlgmr.msrb.gmra.mxu1 %vm664_vm1, %v787_v30 }
 0x13e   : > { %v680_v31 = vpop.f32.mrf.mxu2 }
 0x13f   : > { %v684_v32 = vsel %vm664_vm1, %v680_v31, -inf }
 0x140   : > { %685 = vmax.xlane.f32.xlu0 %v684_v32 }
 0x146   : > { %v682_v33 = vpop.f32.mrf.mxu2 }
 0x1b3   : > { %v686_v34 = vpop.xlane.xlu0 %685 }
 0x1b4   : > { %v687_v35 = vsub.f32 %v680_v31, %v686_v34 }
 0x1b6   : > { %v688_v36 = vmul.f32 1.442695, %v687_v35 }
 0x1b7   : > { %v805_v37 = vpop.f32.mrf.mxu1 }
 0x1b8   : > { %1416 = vpow2.f32 %v688_v36  ;;  %v809_v38 = vsel %vm664_vm1, %v805_v37, -inf }
 0x1b9   : > { %810 = vmax.xlane.f32.xlu2 %v809_v38 }
 0x1be   : > { %v1417_v39 = vpop.eup %1416 }
 0x1bf   : > { %v807_v40 = vpop.f32.mrf.mxu1  ;;  %v690_v41 = vsel %vm664_vm1, %v1417_v39, 0.0 }
 0x1c0   : > { %691 = vadd.xlane.f32.xlu0 %v690_v41 }
 0x1d4   : > { %847 = vrot.lane.b32.xlu0 %v1811_v20, %s1606_s27 }
 0x22c   : > { %v811_v53 = vpop.xlane.xlu2 %810 }
 0x22d   : > { %v812_v54 = vsub.f32 %v805_v37, %v811_v53 }
 0x22f   : > { %v813_v56 = vmul.f32 1.442695, %v812_v54 }
 0x233   : > { %v692_v42 = vpop.xlane.xlu0 %691 }
 0x234   : > { %1418 = vrcp.f32 %v692_v42 }
 0x235   : > { %1420 = vpow2.f32 %v813_v56 }
 0x23a   : > { %v1419_v43 = vpop.eup %1418 }
 0x23b   : > { %v694_v44 = vmul.f32 %v1419_v43, %v692_v42  ;;  %v1421_v59 = vpop.eup %1420 }
 0x23c   : > { %v815_v61 = vsel %vm664_vm1, %v1421_v59, 0.0 }
 0x23d   : > { %v695_v45 = vsub.f32 2.0, %v694_v44 }
 0x23f   : > { %v696_v46 = vmul.f32 %v1419_v43, %v695_v45  ;;  %v1318_v45 = vld [vmem:[#allocation5 + $0x8] sm:$0xff] }
 0x240   : > { %951 = vmatpush.bf16.msra.mxu1 %v1318_v45 }
 0x241   : > { %v697_v47 = vmul.f32 %v1417_v39, %v696_v46  ;;  %v1317_v46 = vld [vmem:[#allocation5] sm:$0xff] }
 0x243   : > { %v698_v48 = vpack.c.bf16 %v697_v47, %v697_v47 }
 0x244   : > { %952 = vmatpush.bf16.msra.mxu1 %v1317_v46 }
 0x245   : > { %1267 = vmatmul.msk.bf16.vlgmr.msra.gmra.mxu3 %vm664_vm1, %v698_v48 }
 0x246   : > { %v848_v49 = vpop.permute.xlu0 %847 }
 0x247   : > { %v853_v50 = vsel %vm664_vm1, %v848_v49, 0 }
 0x248   : > { %862 = vmatpush.bf16.xpose.msra.mxu3 %v853_v50 }
 0x255   : > { %1268 = vmatmul.msk.bf16.vlgmr.msrb.gmra.mxu3 %vm664_vm1, %v728_v23 }
 0x265   : > { %1272 = vmatmul.msk.bf16.vlgmr.msra.gmra.mxu3 %vm664_vm1, %v846_v51 }
 0x2c8   : > { %v1829_v52 = vpop.f32.mrf.mxu3 }
 0x2d0   : > { %v722_v55 = vpop.f32.mrf.mxu3 }
 0x2d1   : > { %v1409_v55 = vld [vmem:[%s1927_s7] ss:$0 sm:$0xff] }
 0x2d8   : > { %v746_v57 = vpop.f32.mrf.mxu3 }
 0x2d9   : > { %v750_v58 = vsel %vm664_vm1, %v746_v57, -inf }
 0x2da   : > { %751 = vmax.xlane.f32.xlu1 %v750_v58 }
 0x2e0   : > { %v748_v60 = vpop.f32.mrf.mxu3 }
 0x2e2   : > { %816 = vadd.xlane.f32.xlu1 %v815_v61 }
 0x2e8   : > { %v864_v62 = vpop.f32.mrf.mxu3 }
 0x2e9   : > { %v868_v63 = vsel %vm664_vm1, %v864_v62, -inf }
 0x2ea   : > { %869 = vmax.xlane.f32.xlu0 %v868_v63 }
 0x2f0   : > { %v866_v0 = vpop.f32.mrf.mxu3 }
 0x2fe   : > { %824 = vrot.lane.b32.xlu0 %v1811_v20, %s1607_s30 }
 0x34d   : > { %v752_v1 = vpop.xlane.xlu1 %751 }
 0x34e   : > { %v753_v2 = vsub.f32 %v746_v57, %v752_v1  ;;  %v1320_v1 = vld [vmem:[#allocation7 + $0x8] sm:$0xff] }
 0x350   : > { %v754_v3 = vmul.f32 1.442695, %v753_v2  ;;  %v1319_v2 = vld [vmem:[#allocation7] sm:$0xff] }
 0x352   : > { %1422 = vpow2.f32 %v754_v3  ;;  %v1324_v3 = vld [vmem:[%s1932_s12 + $0x18] sm:$0xff] }
 0x353   : > { %1074 = vmatpush.bf16.msrb.mxu3 %v1324_v3 }
 0x355   : > { %v817_v5 = vpop.xlane.xlu1 %816 }
 0x356   : > { %1424 = vrcp.f32 %v817_v5 }
 0x358   : > { %v1423_v6 = vpop.eup %1422 }
 0x359   : > { %v756_v7 = vsel %vm664_vm1, %v1423_v6, 0.0 }
 0x35a   : > { %757 = vadd.xlane.f32.xlu2 %v756_v7 }
 0x35c   : > { %v1425_v10 = vpop.eup %1424 }
 0x35d   : > { %v870_v8 = vpop.xlane.xlu0 %869  ;;  %v819_v12 = vmul.f32 %v1425_v10, %v817_v5 }
 0x35e   : > { %v871_v9 = vsub.f32 %v864_v62, %v870_v8 }
 0x35f   : > { %v820_v13 = vsub.f32 2.0, %v819_v12 }
 0x360   : > { %v872_v11 = vmul.f32 1.442695, %v871_v9 }
 0x361   : > { %v821_v16 = vmul.f32 %v1425_v10, %v820_v13 }
 0x362   : > { %1426 = vpow2.f32 %v872_v11 }
 0x363   : > { %v822_v17 = vmul.f32 %v1421_v59, %v821_v16  ;;  %v1411_v16 = vld [vmem:[%s1929_s9] ss:$0 sm:$0xff] }
 0x365   : > { %v823_v21 = vpack.c.bf16 %v822_v17, %v822_v17 }
 0x368   : > { %v1427_v14 = vpop.eup %1426 }
 0x369   : > { %v874_v15 = vsel %vm664_vm1, %v1427_v14, 0.0 }
 0x36a   : > { %875 = vadd.xlane.f32.xlu1 %v874_v15 }
 0x370   : > { %v825_v18 = vpop.permute.xlu0 %824 }
 0x371   : > { %v830_v19 = vsel %vm707_vm2, %v825_v18, 0 }
 0x372   : > { %765 = vrot.lane.b32.xlu2 %v1811_v20, %s1608_s0  ;;  %839 = vmatpush.bf16.msrb.mxu2 %v830_v19  ;;  %s1128_s0 = scalar_lea.hbm %s1936_s16, %s1310_s21 }
 0x373   : > { %s1132_s20 = sshll.u32 %s1128_s0, 4  ;;  %s1133_s20 = int_to_ptr.hbm [resolvable:$true] %s1132_s20 }
 0x374   : > { %s1540_s29 = sshra.s32 %s1133_s20, 4  ;;  %s1541_s29 = int_to_ptr.hbm [resolvable:$true] %s1540_s29 }
 0x375   : > { %1271 = vmatmul.msk.bf16.vlgmr.msrb.gmra.mxu2 %vm664_vm1, %v823_v21  ;;  %s1542_s21 = scalar_lea.hbm %s1541_s29, 8  ;;  %p1547_p3 = scmp.lt.s32.totalorder %s1541_s29, %s1936_s16 }
 0x376   : > { %1021 = vmatpush.bf16.msra.mxu2 %v1320_v1  ;;  %p1543_p0 = scmp.ne.s32.totalorder %s1541_s29, %s1542_s21 }
 0x378   : > { %p1544_p1 = pnand %p1543_p0, %p1736_p5 }
 0x37a   : > { %1022 = vmatpush.bf16.msra.mxu2 %v1319_v2  ;;  %p1545_p2 = pneg %p1544_p1 }
 0x383   : > { %883 = vrot.lane.b32.xlu1 %v1811_v20, %s1609_s17 }
 0x3cd   : > { %v758_v22 = vpop.xlane.xlu2 %757 }
 0x3ce   : > { %1428 = vrcp.f32 %v758_v22 }
 0x3d4   : > { %v1429_v23 = vpop.eup %1428 }
 0x3d5   : > { %v760_v24 = vmul.f32 %v1429_v23, %v758_v22  ;;  %v766_v25 = vpop.permute.xlu2 %765  ;;  %v1322_v22 = vld [vmem:[%s1932_s12 + $0x8] sm:$0xff] }
 0x3d6   : > { %v771_v26 = vsel %vm707_vm2, %v766_v25, 0 }
 0x3d7   : > { %v761_v27 = vsub.f32 2.0, %v760_v24  ;;  %780 = vmatpush.bf16.msrb.mxu0 %v771_v26  ;;  %v1412_v24 = vld [vmem:[%s1931_s11] ss:$0 sm:$0xff] }
 0x3d9   : > { %v762_v28 = vmul.f32 %v1429_v23, %v761_v27  ;;  %v1321_v23 = vld [vmem:[%s1932_s12] sm:$0xff] }
 0x3db   : > { %v763_v29 = vmul.f32 %v1423_v6, %v762_v28  ;;  %v1323_v6 = vld [vmem:[%s1932_s12 + $0x10] sm:$0xff] }
 0x3dc   : > { %1075 = vmatpush.bf16.msrb.mxu3 %v1323_v6 }
 0x3dd   : > { %v764_v30 = vpack.c.bf16 %v763_v29, %v763_v29  ;;  %v876_v31 = vpop.xlane.xlu1 %875 }
 0x3de   : > { %1430 = vrcp.f32 %v876_v31 }
 0x3df   : > { %1269 = vmatmul.msk.bf16.vlgmr.msrb.gmra.mxu0 %vm664_vm1, %v764_v30  ;;  %v1413_v30 = vld [vmem:[%s1933_s13] ss:$0 sm:$0xff] }
 0x3e0   : > { %1076 = vmatpush.bf16.msrb.mxu3 %v1322_v22 }
 0x3e4   : > { %v1431_v32 = vpop.eup %1430  ;;  %1077 = vmatpush.bf16.msrb.mxu3 %v1321_v23 }
 0x3e5   : > { %v878_v33 = vmul.f32 %v1431_v32, %v876_v31 }
 0x3e7   : > { %v879_v34 = vsub.f32 2.0, %v878_v33 }
 0x3e9   : > { %v880_v20 = vmul.f32 %v1431_v32, %v879_v34 }
 0x3eb   : > { %v881_v35 = vmul.f32 %v1427_v14, %v880_v20  ;;  %v1410_v14 = vld [vmem:[%s1928_s8] ss:$0 sm:$0xff] }
 0x3ed   : > { %v882_v38 = vpack.c.bf16 %v881_v35, %v881_v35 }
 0x3f5   : > { %v884_v36 = vpop.permute.xlu1 %883 }
 0x3f6   : > { %v889_v37 = vsel %vm707_vm2, %v884_v36, 0 }
 0x3f7   : > { %898 = vmatpush.bf16.msra.mxu0 %v889_v37 }
 0x3f8   : > { %v841_v39 = vpop.f32.mrf.mxu2 }
 0x3f9   : > { %909 = vrot.lane.b32.xlu0 %v841_v39, %s1610_s18 }
 0x3fa   : > { %1273 = vmatmul.msk.bf16.vlgmr.msra.gmra.mxu0 %vm664_vm1, %v882_v38 }
 0x400   : > { %v843_v40 = vpop.f32.mrf.mxu2 }
 0x45c   : > { %v782_v41 = vpop.f32.mrf.mxu0 }
 0x45d   : > { %905 = vrot.lane.b32.xlu2 %v782_v41, %s1611_s26 }
 0x464   : > { %v784_v42 = vpop.f32.mrf.mxu0 }
 0x46b   : > { %v910_v49 = vpop.permute.xlu0 %909 }
 0x477   : > { %v900_v43 = vpop.f32.mrf.mxu0 }
 0x478   : > { %913 = vrot.lane.b32.xlu2 %v900_v43, %s1612_s19  ;;  %s575_s19 = scalar_lea.vmem [#allocation8], %s1245_s4  ;;  %s1546_s4 = scalar_lea.hbm %s1936_s16, 16 }
 0x479   : > { %s1130_s25 = sshll.u32 %s575_s19, 4  ;;  %p1548_p4 = scmp.lt.s32.totalorder %s1546_s4, %s1542_s21  ;;  %s1131_s25 = int_to_ptr.vmem [resolvable:$true] %s1130_s25 }
 0x47b   : > { %p1549_p7 = por %p1548_p4, %p1547_p3 }
 0x47d   : > { %p1550_p8 = pnand %p1549_p7, %p1545_p2 }
 0x47f   : > { %v902_v44 = vpop.f32.mrf.mxu0 }
 0x4b7   : > { %v906_v47 = vpop.permute.xlu2 %905 }
 0x4b8   : > { %v916_v48 = vsel %vm664_vm1, %v1829_v52, %v906_v47 }
 0x4b9   : > { %v918_v51 = vsel %vm917_vm3, %v916_v48, %v910_v49  ;;  %v1414_v49 = vld [vmem:[%s1934_s14] ss:$0 sm:$0xff] }
 0x4d2   : > { %v914_v50 = vpop.permute.xlu2 %913 }
 0x4d3   : > { %v920_v53 = vsel %vm919_vm4, %v918_v51, %v914_v50  ;;  %v1415_v51 = vld [vmem:[%s1935_s15] ss:$0 sm:$0xff] }
 0x4d4   : > { %v921_v54 = vpack.c.bf16 %v920_v53, %v920_v53 }
 0x4d6   : > { %1282 = vmatmul.msk.bf16.vlgmr.msra.gmra.mxu1 %vm609_vm0, %v921_v54 }
 0x553   : > { %v954_v56 = vpop.f32.mrf.mxu1 }
 0x554   : > { %v955_v57 = vadd.f32 %v1409_v55, %v954_v56 }
 0x556   : > { %v958_v58 = vadd.f32 %v955_v57, %v1798_v4 }
 0x558   : > { %v959_v59 = vsel %vm609_vm0, %v958_v58, 0.0 }
 0x559   : > { %960 = vadd.xlane.f32.xlu0 %v959_v59 }
 0x55b   : > { %v956_v52 = vpop.f32.mrf.mxu1 }
 0x5cc   : > { %v961_v60 = vpop.xlane.xlu0 %960 }
 0x5cd   : > { %v962_v61 = vmul.f32 0.03125, %v961_v60 }
 0x5cf   : > { %v963_v62 = vsub.f32 %v958_v58, %v962_v61 }
 0x5d1   : > { %v964_v63 = vmul.f32 %v963_v62, %v963_v62 }
 0x5d3   : > { %v965_v0 = vsel %vm609_vm0, %v964_v63, 0.0 }
 0x5d4   : > { %966 = vadd.xlane.f32.xlu1 %v965_v0 }
 0x647   : > { %v967_v4 = vpop.xlane.xlu1 %966 }
 0x648   : > { %v968_v5 = vmul.f32 0.03125, %v967_v4 }
 0x64a   : > { %v969_v7 = vadd.f32 1e-05, %v968_v5 }
 0x64c   : > { %1432 = vrsqrt.f32 %v969_v7  ;;  %vm976_vm6 = vweird.f32 %v969_v7 }
 0x652   : > { %v1433_v8 = vpop.eup %1432 }
 0x653   : > { %v971_v9 = vmul.f32 %v1433_v8, %v969_v7  ;;  %vm977_vm5 = vweird.f32 %v1433_v8 }
 0x654   : > { %vm978_vm7 = vmor %vm976_vm6, %vm977_vm5 }
 0x655   : > { %v972_v10 = vmul.f32 %v1433_v8, %v971_v9 }
 0x657   : > { %v973_v11 = vmul.f32 0.5, %v972_v10 }
 0x659   : > { %v974_v12 = vsub.f32 1.5, %v973_v11 }
 0x65b   : > { %v975_v13 = vmul.f32 %v1433_v8, %v974_v12 }
 0x65d   : > { %v979_v15 = vsel %vm978_vm7, %v1433_v8, %v975_v13 }
 0x65e   : > { %v980_v17 = vmul.f32 %v979_v15, %v963_v62 }
 0x660   : > { %v985_v18 = vmul.f32 %v1410_v14, %v980_v17 }
 0x662   : > { %v990_v19 = vadd.f32 %v1411_v16, %v985_v18 }
 0x664   : > { %v991_v21 = vpack.c.bf16 %v990_v19, %v990_v19 }
 0x666   : > { %1291 = vmatmul.msk.bf16.vlgmr.msra.gmra.mxu2 %vm609_vm0, %v991_v21 }
 0x6e9   : > { %v1024_v25 = vpop.f32.mrf.mxu2 }
 0x6ea   : > { %v1025_v26 = vadd.f32 %v1412_v24, %v1024_v25 }
 0x6ec   : > { %v1028_v27 = vmax.f32 %v1025_v26, 0.0 }
 0x6ee   : > { %v1029_v28 = vpack.c.bf16 %v1028_v27, %v1028_v27 }
 0x6f0   : > { %1308 = vmatmul.msk.bf16.vlgmr.msrb.gmra.mxu3 %vm1066_vm8, %v1029_v28 }
 0x6f1   : > { %v1026_v29 = vpop.f32.mrf.mxu2 }
 0x773   : > { %v1079_v31 = vpop.f32.mrf.mxu3 }
 0x774   : > { %v1080_v32 = vadd.f32 %v1413_v30, %v1079_v31 }
 0x776   : > { %v1083_v33 = vadd.f32 %v1080_v32, %v990_v19 }
 0x778   : > { %v1084_v34 = vsel %vm609_vm0, %v1083_v33, 0.0 }
 0x779   : > { %1085 = vadd.xlane.f32.xlu2 %v1084_v34 }
 0x77b   : > { %v1081_v20 = vpop.f32.mrf.mxu3 }
 0x7ec   : > { %v1086_v35 = vpop.xlane.xlu2 %1085 }
 0x7ed   : > { %v1087_v36 = vmul.f32 0.03125, %v1086_v35 }
 0x7ef   : > { %v1088_v37 = vsub.f32 %v1083_v33, %v1087_v36 }
 0x7f1   : > { %v1089_v38 = vmul.f32 %v1088_v37, %v1088_v37 }
 0x7f3   : > { %v1090_v39 = vsel %vm609_vm0, %v1089_v38, 0.0 }
 0x7f4   : > { %1091 = vadd.xlane.f32.xlu0 %v1090_v39 }
 0x867   : > { %v1092_v40 = vpop.xlane.xlu0 %1091 }
 0x868   : > { %v1093_v41 = vmul.f32 0.03125, %v1092_v40 }
 0x86a   : > { %v1094_v42 = vadd.f32 1e-05, %v1093_v41 }
 0x86c   : > { %1434 = vrsqrt.f32 %v1094_v42  ;;  %vm1101_vm10 = vweird.f32 %v1094_v42 }
 0x872   : > { %v1435_v43 = vpop.eup %1434 }
 0x873   : > { %v1096_v44 = vmul.f32 %v1435_v43, %v1094_v42  ;;  %vm1102_vm9 = vweird.f32 %v1435_v43 }
 0x874   : > { %vm1103_vm11 = vmor %vm1101_vm10, %vm1102_vm9 }
 0x875   : > { %v1097_v45 = vmul.f32 %v1435_v43, %v1096_v44 }
 0x877   : > { %v1098_v46 = vmul.f32 0.5, %v1097_v45 }
 0x879   : > { %v1099_v47 = vsub.f32 1.5, %v1098_v46 }
 0x87b   : > { %v1100_v48 = vmul.f32 %v1435_v43, %v1099_v47 }
 0x87d   : > { %v1104_v50 = vsel %vm1103_vm11, %v1435_v43, %v1100_v48 }
 0x87e   : > { %v1105_v53 = vmul.f32 %v1104_v50, %v1088_v37 }
 0x880   : > { %v1110_v54 = vmul.f32 %v1414_v49, %v1105_v53 }
 0x882   : > { %v1115_v55 = vadd.f32 %v1415_v51, %v1110_v54 }
 0x884   : > { %1116 = vst.msk [vmem:[%s575_s19] sm:$0xff] %vm609_vm0, %v1115_v55 }
 0x885   : > { %1553 = shalt.err (!%p1550_p8)
}
 0x886   : > { %1337 = dma.vmem_to_hbm [thread:$0]  (%p1736_p5), %s1131_s25, 128, %s1133_s20, %s1118_s28  }
 0x887 PF: > { %s1963_s6 = sld [smem:[#allocation14_spill]] }
 0x888   : > { %s1964_s0 = sld [smem:[#allocation12_spill]] }
 0x88d   : > { %p1359_p9 = scmp.ge.s32.totalorder %s1963_s6, 2 }
 0x88e   : > { %s1144_s18 = sand.u32 1, %s1964_s0  }
 0x88f   : > { %p1350_p10 = pnand %p1359_p9, %p1740_p6  ;;  %s1145_s19 = scalar_lea.sflag [#allocation4], %s1144_s18 }
 0x891   : > { %p1351_p11 = pneg %p1350_p10 }
 0x893   : > { %1579 = dma.done.wait (%p1351_p11), %s1145_s19, 128  }
 0x894   : > { %1581 = vsyncadd (%p1351_p11), %s1145_s19, 4294967168  ;;  %s1966_s24 = sld [smem:[#allocation15_spill]]  ;;  %s1969_s21 = smov %s1588_s22 }
 0x895   : > { %s1967_s29 = sld [smem:[#allocation13_spill]] }
 0x896   : > { %s1968_s23 = sld [smem:[#allocation16_spill]] }
 0x89a   : > { %p28_p12 = scmp.ge.s32.totalorder %s1966_s24, 4  }
 0x89b   : > { %s1970_s22 = smov %s1967_s29 }
 0x89c   :  { %30 = sbr.rel (!%p28_p12) target bundleno = 9 (0x9), region = 135 }
 0x8a1   :  { %1151 = vsyncpa [#allocation3], 1 }
 0x8a2   :  { %1153 = vsyncpa [#allocation3 + $0x1], 1 }
 0x8a3   :  { %1154 = vsyncpa [#allocation6], 1 }
 0x8a4   :  { %1155 = vsyncpa [#allocation4], 1 }
 0x8a5   :  { %1157 = vsyncpa [#allocation4 + $0x1], 1 }

</bundles_post_ra>
